<compile_context>
chip_gen: v7x
topology: tpu7x:2x2x1
jax: 0.10.0
libtpu: 0.0.40
codegen_flags: <defaults>
</compile_context>

<pallas_src>
import functools
import math

import jax
import jax.numpy as jnp
from jax.experimental import pallas as pl
from jax.experimental.pallas import tpu as pltpu


def _round_up(a, b):
    return -(-a // b) * b


# ----------------------------- in-kernel conv ------------------------------

def _conv_tile(x_ref, w_ref, *, K, T_out_pad, stride, fold):
    """Temporal (k,1) conv over one tile of (n, v) panels.

    x_ref: (P, T_in_ext, C_in)  -- P whole panels, time axis already zero-padded
    w_ref: (K, C_in, C_lane)    -- per-tap weights, C_out zero-padded to 128 lanes
    returns (P * T_out_pad, C_lane) float32
    """
    P, _, C_in = x_ref.shape
    C_lane = w_ref.shape[-1]
    R = P * T_out_pad
    x = x_ref[...]

    def tap(k):
        if stride == 1:
            return x[:, k:k + T_out_pad, :]
        # TODO(synk): for stride > 1 pre-split time into `stride` phases in the
        # wrapper so this slice is unit-stride (avoids per-tap strided relayout).
        return x[:, k:k + (T_out_pad - 1) * stride + 1:stride, :]

    if fold:
        # Fold all K taps into the contraction dimension: a single deep matmul.
        xf = jnp.concatenate([tap(k) for k in range(K)], axis=-1)   # (P,T_out_pad,K*C_in)
        xf = xf.reshape(R, K * C_in)               # free merge: T_out_pad % 8 == 0
        wf = w_ref[...].reshape(K * C_in, C_lane)  # free merge: C_in % 8 == 0 here
        return jnp.dot(xf, wf, preferred_element_type=jnp.float32)

    acc = jnp.zeros((R, C_lane), dtype=jnp.float32)
    for k in range(K):                             # K is tiny (3/5/9): unrolled
        acc = acc + jnp.dot(tap(k).reshape(R, C_in), w_ref[k],
                            preferred_element_type=jnp.float32)
    return acc


# ----------------------------- Pallas kernels ------------------------------

def _stats_kernel(x_ref, w_ref, stats_ref, *, K, T_out, T_out_pad, stride, fold):
    # pass 1: conv recomputed in VMEM; per-channel sum / sumsq accumulated.
    # grid = (core, step); each core writes its own partial stats block.
    @pl.when(pl.program_id(1) == 0)
    def _():
        stats_ref[...] = jnp.zeros_like(stats_ref)

    y = _conv_tile(x_ref, w_ref, K=K, T_out_pad=T_out_pad, stride=stride, fold=fold)
    R = y.shape[0]
    if T_out_pad == T_out:
        ones = jnp.ones((1, R), dtype=jnp.float32)
    else:
        # Mask the padded output rows (they can contain real partial windows).
        t = jax.lax.broadcasted_iota(jnp.int32, (1, R), 1) % T_out_pad
        ones = (t < T_out).astype(jnp.float32)
    # Column reductions on the MXU (frees VPU/XLU slots; pass 1 stays DMA-bound).
    s1 = jnp.dot(ones, y, preferred_element_type=jnp.float32)        # (1, C_lane)
    s2 = jnp.dot(ones, y * y, preferred_element_type=jnp.float32)    # (1, C_lane)
    stats_ref[...] += jnp.concatenate([s1, s2], axis=0)[None]


def _conv_bn_kernel(x_ref, w_ref, scale_ref, shift_ref, o_ref, *, K, T_out_pad,
                    stride, fold):
    # pass 2: recompute conv, apply folded BN scale/shift, lane-dense store.
    y = _conv_tile(x_ref, w_ref, K=K, T_out_pad=T_out_pad, stride=stride, fold=fold)
    o_ref[...] = (y * scale_ref[...] + shift_ref[...]).astype(o_ref.dtype)


# ----------------------------- tiling helpers -------------------------------

def _vmem_budgets():
    """(buffer_budget_bytes, vmem_limit_bytes) per TPU generation."""
    cap = 128 * 1024 * 1024
    try:
        info = pltpu.get_tpu_info()
        cap = int(getattr(info, "vmem_capacity_bytes", cap))
    except Exception:
        pass
    if cap <= 80 * 1024 * 1024:          # v7x-class: 64 MiB physical VMEM
        return 32 * 1024 * 1024, 52 * 1024 * 1024
    return 72 * 1024 * 1024, 104 * 1024 * 1024   # v5e / v6e: 128 MiB physical


def _pick_panel_tile(num_panels, t_in_ext, t_out_pad, c_in, c_lane, K,
                     in_itemsize, out_itemsize, budget):
    lanes_in = _round_up(max(c_in, 1), 128)
    lanes_fold = _round_up(max(K * c_in, 1), 128)
    # fixed overhead: double-buffered weights + scale/shift + slack
    fixed = 2 * K * _round_up(c_in, 8) * c_lane * in_itemsize + (1 << 20)
    budget = max(budget - fixed, 1 << 20)
    per_panel = (2 * t_in_ext * lanes_in * in_itemsize            # x block (double-buffered)
                 + t_out_pad * max(lanes_in, lanes_fold) * in_itemsize  # gathered LHS temp
                 + 2 * t_out_pad * c_lane * 4                      # f32 y and y*y temporaries
                 + 2 * t_out_pad * c_lane * out_itemsize)          # out block (double-buffered)
    tile = max(1, budget // per_panel)
    # keep >= 2 grid steps so v7x's second TensorCore has work and DMA pipelines.
    tile = min(tile, max(1, -(-num_panels // 2)))
    return int(tile)


# ----------------------------- wrapper ---------------------------------------

def unit_tcn_forward(x, w, b, gamma, beta, *, kernel_size=5, stride=1, eps=1e-5,
                     compute_dtype=jnp.float32, out_dtype=jnp.float32):
    """x: (N, C_in, T, V); w: (C_out, C_in, K, 1); b, gamma, beta: (C_out,).

    compute_dtype: dtype of the activation/weight stream fed to the MXU
    (accumulation is always f32); bf16 halves HBM reads on all generations.
    out_dtype: HBM writeback dtype (bf16 halves the dominant write stream if the
    consumer tolerates it; default f32 keeps module semantics exactly).
    """
    del b  # conv bias is exactly cancelled by training-mode BatchNorm
    N, C_in, T, V = x.shape
    C_out, C_in_w, K, _ = w.shape
    assert C_in_w == C_in
    assert K == kernel_size, (K, kernel_size)  # keep pad/T_out consistent with w
    pad = (kernel_size - 1) // 2
    T_conv_in = T + 2 * pad
    T_out = (T_conv_in - K) // stride + 1
    T_out_pad = _round_up(T_out, 8)                   # free sublane flatten / (8,128) rule
    T_in_ext = max((T_out_pad - 1) * stride + K, T + pad)

    NV = N * V
    C_lane = _round_up(C_out, 128)                    # lane-dense output width
    fold = (C_in % 128 == 0)                          # lane-aligned K-tap fold only

    in_itemsize = jnp.dtype(compute_dtype).itemsize
    out_itemsize = jnp.dtype(out_dtype).itemsize
    buf_budget, vmem_cap = _vmem_budgets()
    TILE_P = _pick_panel_tile(NV, T_in_ext, T_out_pad, C_in, C_lane, K,
                              in_itemsize, out_itemsize, buf_budget)
    half = -(-NV // (2 * TILE_P))
    grid_p = 2 * half                                 # even grid for megacore pass 2
    NV_pad = grid_p * TILE_P

    # ---- glue: cast first (halves transpose/pad HBM traffic), then relayout ----
    xt = x.astype(compute_dtype)
    xt = jnp.transpose(xt, (0, 3, 2, 1)).reshape(NV, T, C_in)        # channels -> lanes
    xt = jnp.pad(xt, ((0, NV_pad - NV), (pad, T_in_ext - T - pad), (0, 0)))

    wk = jnp.transpose(w[:, :, :, 0], (2, 1, 0))                     # (K, C_in, C_out)
    wk = jnp.pad(wk, ((0, 0), (0, 0), (0, C_lane - C_out))).astype(compute_dtype)

    kern = dict(K=K, T_out_pad=T_out_pad, stride=stride, fold=fold)
    NC = 2                       # per-core partial stats (no-op cost on 1-TC chips)
    steps = grid_p // NC

    # ---- pass 1: BN batch statistics (conv output never written to HBM) ----
    stats = pl.pallas_call(
        functools.partial(_stats_kernel, T_out=T_out, **kern),
        out_shape=jax.ShapeDtypeStruct((NC, 2, C_lane), jnp.float32),
        grid=(NC, steps),
        in_specs=[
            pl.BlockSpec((TILE_P, T_in_ext, C_in),
                         lambda c, i: (c * steps + i, 0, 0)),
            pl.BlockSpec((K, C_in, C_lane), lambda c, i: (0, 0, 0)),
        ],
        out_specs=pl.BlockSpec((1, 2, C_lane), lambda c, i: (c, 0, 0)),
        compiler_params=pltpu.CompilerParams(
            dimension_semantics=("parallel", "arbitrary"),
            vmem_limit_bytes=vmem_cap),
    )(xt, wk)

    M = N * T_out * V                                 # real element count per channel
    tot = jnp.sum(stats, axis=0)                      # combine per-core partials
    mean = tot[0, :C_out] / M
    var = tot[1, :C_out] / M - mean * mean            # biased variance (training BN)
    var = jnp.maximum(var, 0.0)                       # guard E[y^2]-E[y]^2 cancellation
    # TODO(synk): for very large M switch to centered / Welford per-tile stats.
    rstd = jax.lax.rsqrt(var + eps)
    scale = gamma.astype(jnp.float32) * rstd
    shift = beta.astype(jnp.float32) - mean * scale
    scale = jnp.pad(scale, (0, C_lane - C_out)).reshape(1, C_lane)
    shift = jnp.pad(shift, (0, C_lane - C_out)).reshape(1, C_lane)

    # ---- pass 2: fused conv + BN apply, lane-dense output ----
    out2d = pl.pallas_call(
        functools.partial(_conv_bn_kernel, **kern),
        out_shape=jax.ShapeDtypeStruct((NV_pad * T_out_pad, C_lane), out_dtype),
        grid=(grid_p,),
        in_specs=[
            pl.BlockSpec((TILE_P, T_in_ext, C_in), lambda i: (i, 0, 0)),
            pl.BlockSpec((K, C_in, C_lane), lambda i: (0, 0, 0)),
            pl.BlockSpec((1, C_lane), lambda i: (0, 0)),
            pl.BlockSpec((1, C_lane), lambda i: (0, 0)),
        ],
        out_specs=pl.BlockSpec((TILE_P * T_out_pad, C_lane), lambda i: (i, 0)),
        compiler_params=pltpu.CompilerParams(
            dimension_semantics=("parallel",),
            vmem_limit_bytes=vmem_cap),
    )(xt, wk, scale, shift)

    out = out2d.reshape(NV_pad, T_out_pad, C_lane)[:NV, :T_out, :C_out]
    return out.reshape(N, V, T_out, C_out).transpose(0, 3, 2, 1)  # back to NCHW


# ----------------------------- reference (pure JAX) -------------------------

def unit_tcn_reference(x, w, b, gamma, beta, *, kernel_size=5, stride=1, eps=1e-5,
                       compute_dtype=jnp.float32):
    # Quantize inputs the same way the kernel does so the check isolates kernel
    # logic (the bf16 input cast is an intentional, accepted approximation).
    xq = x.astype(compute_dtype).astype(jnp.float32)
    wq = w.astype(compute_dtype).astype(jnp.float32)
    pad = (kernel_size - 1) // 2
    y = jax.lax.conv_general_dilated(
        xq, wq, window_strides=(stride, 1), padding=((pad, pad), (0, 0)),
        dimension_numbers=("NCHW", "OIHW", "NCHW"),
    ) + b.reshape(1, -1, 1, 1)
    mean = jnp.mean(y, axis=(0, 2, 3), keepdims=True)
    var = jnp.mean((y - mean) ** 2, axis=(0, 2, 3), keepdims=True)
    return (y - mean) * jax.lax.rsqrt(var + eps) * gamma.reshape(1, -1, 1, 1) \
        + beta.reshape(1, -1, 1, 1)


# ----------------------------- main ------------------------------------------

if __name__ == "__main__":
    key = jax.random.PRNGKey(0)
    N, C_in, T, V = 2, 4, 16, 16
    C_out, K, stride = 8, 5, 1

    kx, kw = jax.random.split(key)
    x = jax.random.normal(kx, (N, C_in, T, V), dtype=jnp.float32)

    # kaiming_normal_(mode='fan_out'): std = sqrt(2 / (C_out * K * 1))
    fan_out = C_out * K * 1
    w = jax.random.normal(kw, (C_out, C_in, K, 1), dtype=jnp.float32) * math.sqrt(2.0 / fan_out)
    b = jnp.zeros((C_out,), dtype=jnp.float32)       # conv bias init = 0
    gamma = jnp.ones((C_out,), dtype=jnp.float32)    # bn weight init = 1
    beta = jnp.zeros((C_out,), dtype=jnp.float32)    # bn bias init = 0

    # bf16 activation/weight stream (f32 accumulation) halves HBM reads on v5e/v6e/v7x.
    compute_dtype = jnp.bfloat16

    out = unit_tcn_forward(x, w, b, gamma, beta, kernel_size=K, stride=stride,
                           compute_dtype=compute_dtype)
    out = jax.block_until_ready(out)

    ref = unit_tcn_reference(x, w, b, gamma, beta, kernel_size=K, stride=stride,
                             compute_dtype=compute_dtype)
    assert out.shape == (N, C_out, T, V), out.shape
    err = float(jnp.max(jnp.abs(out - ref)))
    assert err < 2e-3, err

    print("KERNEL_OK")
</pallas_src>

<mosaic_0001>
module attributes {stable_mosaic.version = 11 : i64} {
  func.func @_stats_kernel(%arg0: i32, %arg1: i32, %arg2: memref<16x20x4xbf16, #tpu.memory_space<vmem>>, %arg3: memref<5x4x128xbf16, #tpu.memory_space<vmem>>, %arg4: memref<1x2x128xf32, #tpu.memory_space<vmem>>) attributes {dimension_semantics = [#tpu.dimension_semantics<parallel>, #tpu.dimension_semantics<arbitrary>], iteration_bounds = array<i64: 2, 1>, scalar_prefetch = 0 : i64, scratch_operands = 0 : i64, tpu.core_type = #tpu.core_type<tc>, window_params = [{transform_indices = @transform_0, window_bounds = array<i64: 16, 20, 4>}, {pipeline_mode = #tpu.pipeline_mode<synchronous>, transform_indices = @transform_1, window_bounds = array<i64: 5, 4, 128>}, {transform_indices = @transform_2, window_bounds = array<i64: 1, 2, 128>}]} {
    %c0_i32 = arith.constant 0 : i32
    %0 = arith.cmpi eq, %arg1, %c0_i32 : i32
    %1 = arith.extui %0 : i1 to i32
    %c0_i32_0 = arith.constant 0 : i32
    %2 = arith.cmpi ne, %1, %c0_i32_0 : i32
    scf.if %2 {
      %cst_28 = arith.constant 0.000000e+00 : f32
      %44 = vector.broadcast %cst_28 : f32 to vector<1x2x128xf32>
      %c0_29 = arith.constant 0 : index
      %c0_30 = arith.constant 0 : index
      %c0_31 = arith.constant 0 : index
      %45 = vector.load %arg4[%c0_29, %c0_30, %c0_31] : memref<1x2x128xf32, #tpu.memory_space<vmem>>, vector<1x2x128xf32>
      tpu.vector_store %arg4[%c0_29, %c0_30, %c0_31], %44 {strides = array<i32>} : memref<1x2x128xf32, #tpu.memory_space<vmem>>, vector<1x2x128xf32>,
    } else {
    }
    %c0 = arith.constant 0 : index
    %c0_1 = arith.constant 0 : index
    %c0_2 = arith.constant 0 : index
    %3 = vector.load %arg2[%c0, %c0_1, %c0_2] : memref<16x20x4xbf16, #tpu.memory_space<vmem>>, vector<16x20x4xbf16>
    %cst = arith.constant 0.000000e+00 : f32
    %4 = vector.broadcast %cst : f32 to vector<256x128xf32>
    %5 = vector.extract_strided_slice %3 {offsets = [0, 0, 0], sizes = [16, 16, 4], strides = [1, 1, 1]} : vector<16x20x4xbf16> to vector<16x16x4xbf16>
    %6 = vector.shape_cast %5 : vector<16x16x4xbf16> to vector<256x4xbf16>
    %c0_3 = arith.constant 0 : index
    %c0_4 = arith.constant 0 : index
    %c0_5 = arith.constant 0 : index
    %7 = vector.load %arg3[%c0_3, %c0_4, %c0_5] : memref<5x4x128xbf16, #tpu.memory_space<vmem>>, vector<1x4x128xbf16>
    %8 = vector.shape_cast %7 : vector<1x4x128xbf16> to vector<4x128xbf16>
    %cst_6 = arith.constant dense<0.000000e+00> : vector<256x128xf32>
    %9 = tpu.matmul %6, %8, %cst_6 {dimension_numbers = #tpu.dot_dimension_numbers<[1], [0], [0], [1], [0, 0, 1, 1], [], []>} : vector<256x4xbf16>, vector<4x128xbf16>, vector<256x128xf32> -> vector<256x128xf32>
    %10 = arith.addf %4, %9 : vector<256x128xf32>
    %11 = vector.extract_strided_slice %3 {offsets = [0, 1, 0], sizes = [16, 16, 4], strides = [1, 1, 1]} : vector<16x20x4xbf16> to vector<16x16x4xbf16>
    %12 = vector.shape_cast %11 : vector<16x16x4xbf16> to vector<256x4xbf16>
    %c1 = arith.constant 1 : index
    %c0_7 = arith.constant 0 : index
    %c0_8 = arith.constant 0 : index
    %13 = vector.load %arg3[%c1, %c0_7, %c0_8] : memref<5x4x128xbf16, #tpu.memory_space<vmem>>, vector<1x4x128xbf16>
    %14 = vector.shape_cast %13 : vector<1x4x128xbf16> to vector<4x128xbf16>
    %cst_9 = arith.constant dense<0.000000e+00> : vector<256x128xf32>
    %15 = tpu.matmul %12, %14, %cst_9 {dimension_numbers = #tpu.dot_dimension_numbers<[1], [0], [0], [1], [0, 0, 1, 1], [], []>} : vector<256x4xbf16>, vector<4x128xbf16>, vector<256x128xf32> -> vector<256x128xf32>
    %16 = arith.addf %10, %15 : vector<256x128xf32>
    %17 = vector.extract_strided_slice %3 {offsets = [0, 2, 0], sizes = [16, 16, 4], strides = [1, 1, 1]} : vector<16x20x4xbf16> to vector<16x16x4xbf16>
    %18 = vector.shape_cast %17 : vector<16x16x4xbf16> to vector<256x4xbf16>
    %c2 = arith.constant 2 : index
    %c0_10 = arith.constant 0 : index
    %c0_11 = arith.constant 0 : index
    %19 = vector.load %arg3[%c2, %c0_10, %c0_11] : memref<5x4x128xbf16, #tpu.memory_space<vmem>>, vector<1x4x128xbf16>
    %20 = vector.shape_cast %19 : vector<1x4x128xbf16> to vector<4x128xbf16>
    %cst_12 = arith.constant dense<0.000000e+00> : vector<256x128xf32>
    %21 = tpu.matmul %18, %20, %cst_12 {dimension_numbers = #tpu.dot_dimension_numbers<[1], [0], [0], [1], [0, 0, 1, 1], [], []>} : vector<256x4xbf16>, vector<4x128xbf16>, vector<256x128xf32> -> vector<256x128xf32>
    %22 = arith.addf %16, %21 : vector<256x128xf32>
    %23 = vector.extract_strided_slice %3 {offsets = [0, 3, 0], sizes = [16, 16, 4], strides = [1, 1, 1]} : vector<16x20x4xbf16> to vector<16x16x4xbf16>
    %24 = vector.shape_cast %23 : vector<16x16x4xbf16> to vector<256x4xbf16>
    %c3 = arith.constant 3 : index
    %c0_13 = arith.constant 0 : index
    %c0_14 = arith.constant 0 : index
    %25 = vector.load %arg3[%c3, %c0_13, %c0_14] : memref<5x4x128xbf16, #tpu.memory_space<vmem>>, vector<1x4x128xbf16>
    %26 = vector.shape_cast %25 : vector<1x4x128xbf16> to vector<4x128xbf16>
    %cst_15 = arith.constant dense<0.000000e+00> : vector<256x128xf32>
    %27 = tpu.matmul %24, %26, %cst_15 {dimension_numbers = #tpu.dot_dimension_numbers<[1], [0], [0], [1], [0, 0, 1, 1], [], []>} : vector<256x4xbf16>, vector<4x128xbf16>, vector<256x128xf32> -> vector<256x128xf32>
    %28 = arith.addf %22, %27 : vector<256x128xf32>
    %29 = vector.extract_strided_slice %3 {offsets = [0, 4, 0], sizes = [16, 16, 4], strides = [1, 1, 1]} : vector<16x20x4xbf16> to vector<16x16x4xbf16>
    %30 = vector.shape_cast %29 : vector<16x16x4xbf16> to vector<256x4xbf16>
    %c4 = arith.constant 4 : index
    %c0_16 = arith.constant 0 : index
    %c0_17 = arith.constant 0 : index
    %31 = vector.load %arg3[%c4, %c0_16, %c0_17] : memref<5x4x128xbf16, #tpu.memory_space<vmem>>, vector<1x4x128xbf16>
    %32 = vector.shape_cast %31 : vector<1x4x128xbf16> to vector<4x128xbf16>
    %cst_18 = arith.constant dense<0.000000e+00> : vector<256x128xf32>
    %33 = tpu.matmul %30, %32, %cst_18 {dimension_numbers = #tpu.dot_dimension_numbers<[1], [0], [0], [1], [0, 0, 1, 1], [], []>} : vector<256x4xbf16>, vector<4x128xbf16>, vector<256x128xf32> -> vector<256x128xf32>
    %34 = arith.addf %28, %33 : vector<256x128xf32>
    %cst_19 = arith.constant 1.000000e+00 : f32
    %35 = vector.broadcast %cst_19 : f32 to vector<1x256xf32>
    %cst_20 = arith.constant dense<0.000000e+00> : vector<1x128xf32>
    %36 = tpu.matmul %35, %34, %cst_20 {dimension_numbers = #tpu.dot_dimension_numbers<[1], [0], [0], [1], [0, 0, 1, 1], [], []>} : vector<1x256xf32>, vector<256x128xf32>, vector<1x128xf32> -> vector<1x128xf32>
    %37 = arith.mulf %34, %34 : vector<256x128xf32>
    %cst_21 = arith.constant dense<0.000000e+00> : vector<1x128xf32>
    %38 = tpu.matmul %35, %37, %cst_21 {dimension_numbers = #tpu.dot_dimension_numbers<[1], [0], [0], [1], [0, 0, 1, 1], [], []>} : vector<1x256xf32>, vector<256x128xf32>, vector<1x128xf32> -> vector<1x128xf32>
    %c0_22 = arith.constant 0 : index
    %c0_23 = arith.constant 0 : index
    %c0_24 = arith.constant 0 : index
    %39 = vector.load %arg4[%c0_22, %c0_23, %c0_24] : memref<1x2x128xf32, #tpu.memory_space<vmem>>, vector<1x2x128xf32>
    %40 = tpu.concatenate %36, %38 in 0 : vector<1x128xf32>, vector<1x128xf32> -> vector<2x128xf32>
    %41 = vector.shape_cast %40 : vector<2x128xf32> to vector<1x2x128xf32>
    %42 = arith.addf %39, %41 : vector<1x2x128xf32>
    %c0_25 = arith.constant 0 : index
    %c0_26 = arith.constant 0 : index
    %c0_27 = arith.constant 0 : index
    %43 = vector.load %arg4[%c0_25, %c0_26, %c0_27] : memref<1x2x128xf32, #tpu.memory_space<vmem>>, vector<1x2x128xf32>
    tpu.vector_store %arg4[%c0_25, %c0_26, %c0_27], %42 {strides = array<i32>} : memref<1x2x128xf32, #tpu.memory_space<vmem>>, vector<1x2x128xf32>,
    return
  }
  func.func @transform_0(%arg0: i32, %arg1: i32) -> (i32, i32, i32) {
    %c1_i32 = arith.constant 1 : i32
    %0 = arith.muli %arg0, %c1_i32 : i32
    %1 = arith.addi %0, %arg1 : i32
    %c0_i32 = arith.constant 0 : i32
    %c0_i32_0 = arith.constant 0 : i32
    %c0_i32_1 = arith.constant 0 : i32
    return %1, %c0_i32, %c0_i32_0 : i32, i32, i32
  }
  func.func @transform_1(%arg0: i32, %arg1: i32) -> (i32, i32, i32) {
    %c0_i32 = arith.constant 0 : i32
    %c0_i32_0 = arith.constant 0 : i32
    %c0_i32_1 = arith.constant 0 : i32
    %c0_i32_2 = arith.constant 0 : i32
    return %c0_i32, %c0_i32_0, %c0_i32_1 : i32, i32, i32
  }
  func.func @transform_2(%arg0: i32, %arg1: i32) -> (i32, i32, i32) {
    %c0_i32 = arith.constant 0 : i32
    %c0_i32_0 = arith.constant 0 : i32
    %c0_i32_1 = arith.constant 0 : i32
    return %arg0, %c0_i32, %c0_i32_0 : i32, i32, i32
  }
}

</mosaic_0001>

<bundles_post_ra>
// kernel: tpu_custom_call.1
= control target key start
LH: loop header
LB: loop body
LE: loop exit
PB: predicated region body
PF: predicated region fallthrough
CT: control target
= control target key end

     0   :  { %7 = vsyncpa [#allocation3], 0  ;;  %s5405_s0 = inlined_call_operand.hbm [shape: bf16[32,20,4], index: 0, kind: input, shape index: {}]   ;;  %s5406_s1 = inlined_call_operand.hbm [shape: bf16[5,4,128], index: 1, kind: input, shape index: {}]   ;;  %s5407_s2 = inlined_call_operand.hbm [shape: f32[2,2,128], index: 2, kind: output, shape index: {}]  }
   0x1   :  { %9 = vsyncpa [#allocation3 + $0x1], 0 }
   0x2   :  { %10 = vsyncpa [#allocation6], 0 }
   0x3   :  { %11 = vsyncpa [#allocation4], 0 }
   0x4   :  { %13 = vsyncpa [#allocation4 + $0x1], 0  ;;  %s3882_s9 = smov 0   ;;  %s3884_s10 = smov 0  }
   0x5   :  { %s3886_s11 = smov 0   ;;  %s3888_s12 = smov 0  }
   0x6   :  { %s3890_s13 = smov 0   ;;  %s3892_s14 = smov 0  }
   0x7 LB: > { %s2847_s15 = sadd.s32 4294967295, %s3856_s14   ;;  %s2848_s16 = sadd.s32 4294967294, %s3856_s14   ;;  %s3856_s14 = sphi %s3892_s14, %s19_s14   ;;  %s3852_s13 = sphi %s3890_s13, %s5657_s13   ;;  %s3848_s12 = sphi %s3888_s12, %s5656_s12   ;;  %s3844_s11 = sphi %s3886_s11, %s5655_s11   ;;  %s3840_s10 = sphi %s3884_s10, %s5654_s10   ;;  %s3836_s9 = sphi %s3882_s9, %s5653_s9  }
   0x8   : > { %p53_p0 = scmp.ne.s32.totalorder %s3840_s10, %s3836_s9  ;;  %p3916_p1 = scmp.eq.s32.totalorder %s2847_s15, 0 }
   0x9   : > { %p3920_p2 = scmp.eq.s32.totalorder %s2847_s15, 1  ;;  %p104_p3 = scmp.eq.s32.totalorder %s2848_s16, 1 }
   0xa   : > { %s5513_s17 = scalar_select %p3916_p1, 1, 0 }
   0xb   : > { %s5514_s18 = scalar_select %p3920_p2, 1, 0 }
   0xc   : > { %p3926_p4 = por %p3916_p1, %p53_p0  ;;  %p2849_p5 = scmp.ge.s32.totalorder %s3856_s14, 1 }
   0xd   : > { %p3931_p6 = por %p104_p3, %p53_p0  ;;  %p111_p7 = scmp.lt.s32.totalorder %s3856_s14, 3 }
   0xe   : > { %s5515_s19 = scalar_select %p3926_p4, 1, 0 }
   0xf   : > { %s5516_s20 = scalar_select %p3931_p6, 1, 0 }
  0x10   : > { %p3936_p8 = pnand %p2849_p5, %p111_p7  ;;  %s3858_s22 = smov [#allocation5]  }
  0x11   : > { %s123_s23 = sshll.u32 %s3858_s22, 4  ;;  %s31_s25 = sadd.s32 1, %s3852_s13  ;;  %s124_s23 = int_to_ptr.vmem [resolvable:$true] %s123_s23 }
  0x12   : > { %s5517_s21 = scalar_select %p3936_p8, 1, 0 }
  0x13   : > { %p3587_p9 = pneg %p3936_p8  ;;  %s3712_s28 = scalar_lea.hbm %s5406_s1, 160 }
  0x14   : > { %p3713_p12 = scmp.ne.s32.totalorder %s5406_s1, %s3712_s28  ;;  %p3719_p5 = scmp.lt.u32.totalorder %s3712_s28, %s5406_s1 }
  0x15   : > { %p3945_p11 = pnand %p3587_p9, %p3916_p1 }
  0x17   : > { %p3714_p13 = pneg %p3945_p11 }
  0x19   : > { %p3715_p0 = pnand %p3714_p13, %p3713_p12 }
  0x1b   : > { %p3716_p3 = pneg %p3715_p0 }
  0x1d   : > { %p3721_p7 = pnand %p3719_p5, %p3716_p3 }
  0x1f   : > { %3724 = shalt.err (!%p3721_p7)
}
  0x20   : > { %s3725_s5 = scalar_lea.vmem %s124_s23, 160  ;;  %p3733_p1 = scmp.lt.s32.totalorder %s124_s23, %s124_s23 }
  0x21   : > { %p3726_p9 = scmp.ne.s32.totalorder %s124_s23, %s3725_s5  ;;  %p3734_p4 = scmp.lt.s32.totalorder %s3725_s5, %s3725_s5 }
  0x23   : > { %p3728_p10 = pnand %p3726_p9, %p3714_p13  ;;  %p3735_p8 = por %p3734_p4, %p3733_p1 }
  0x25   : > { %p3729_p6 = pneg %p3728_p10 }
  0x27   : > { %p3736_p2 = pnand %p3735_p8, %p3729_p6 }
  0x29   : > { %3739 = shalt.err (!%p3736_p2)
}
  0x2a   : > { %s3859_s6 = smov 32   ;;  %s3860_s7 = smov 2  }
  0x2b   : > { %3590 = dma.hbm_to_vmem [thread:$0]  (!%p3945_p11), %s5406_s1, 160, %s124_s23, [#allocation6], %s3859_s6, %s3859_s6, %s3860_s7  }
  0x2c   : > { %p33_p1 = scmp.ge.s32.totalorder %s31_s25, 2  ;;  %s40_s16 = sadd.s32 1, %s3844_s11 }
  0x2d   : > { %p47_p2 = scmp.ne.s32.totalorder %s3844_s11, %s3840_s10  ;;  %p48_p4 = scmp.eq.s32.totalorder %s3856_s14, 0 }
  0x2e   : > { %s5659_s25 = smov (%p33_p1, %s31_s25), 0  ;;  %p5519_p8 = scmp.ne.s32.totalorder %s5514_s18, 0 }
  0x2f   : > { %p49_p6 = por %p48_p4, %p47_p2  ;;  %s37_s26 = ssub.s32 %s3852_s13, %s5659_s25 }
  0x30   : > { %p3974_p10 = por %p5519_p8, %p47_p2  ;;  %p3600_p12 = scmp.lt.s32.totalorder %s3856_s14, 2 }
  0x31   : > { %p38_p13 = scmp.eq.s32.totalorder %s37_s26, 0  ;;  %s137_s24 = sand.u32 1, %s3844_s11  }
  0x32   : > { %s3576_s27 = smul.u32 192, %s137_s24  ;;  %p3986_p11 = pnand %p3600_p12, %p49_p6 }
  0x33   : > { %s3983_s28 = scalar_select %p38_p13, %s3844_s11, %s40_s16  }
  0x34   : > { %s3577_s23 = smul.u32 3072, %s3852_s13  ;;  %s141_s29 = scalar_lea.vmem [#allocation2], %s3576_s27 }
  0x35   : > { %s150_s30 = sshll.u32 %s141_s29, 4  ;;  %s3997_s6 = scalar_lea.sflag [#allocation3], %s137_s24  ;;  %s3995_s30 = int_to_ptr.vmem [resolvable:$true] %s150_s30 }
  0x36   : > { %s3993_s5 = scalar_lea.hbm %s5405_s0, %s3577_s23  ;;  %p3742_p3 = pneg %p3986_p11 }
  0x37   : > { %s3740_s7 = scalar_lea.hbm %s3993_s5, 3072  ;;  %s3745_s16 = scalar_lea.hbm %s5405_s0, 6144 }
  0x38   : > { %p3741_p0 = scmp.ne.s32.totalorder %s3993_s5, %s3740_s7  ;;  %p3746_p9 = scmp.lt.u32.totalorder %s3993_s5, %s5405_s0 }
  0x39   : > { %p3747_p1 = scmp.lt.u32.totalorder %s3745_s16, %s3740_s7  ;;  %p3749_p4 = scmp.lt.u32.totalorder %s3740_s7, %s3993_s5 }
  0x3a   : > { %p3743_p5 = pnand %p3742_p3, %p3741_p0 }
  0x3b   : > { %p3748_p2 = por %p3747_p1, %p3746_p9 }
  0x3c   : > { %p3744_p7 = pneg %p3743_p5 }
  0x3d   : > { %p3750_p6 = por %p3749_p4, %p3748_p2 }
  0x3f   : > { %p3751_p8 = pnand %p3750_p6, %p3744_p7 }
  0x41   : > { %3754 = shalt.err (!%p3751_p8)
}
  0x42   : > { %s3755_s24 = scalar_lea.vmem %s3995_s30, 3072  ;;  %s3861_s23 = smov [#allocation2]  }
  0x43   : > { %p3756_p12 = scmp.ne.s32.totalorder %s3995_s30, %s3755_s24  ;;  %s3760_s29 = sshll.u32 %s3861_s23, 4  ;;  %s3761_s29 = int_to_ptr.vmem [resolvable:$false] %s3760_s29 }
  0x44   : > { %s3762_s4 = scalar_lea.vmem %s3761_s29, 6144  ;;  %p3763_p5 = scmp.lt.s32.totalorder %s3995_s30, %s3761_s29 }
  0x45   : > { %p3758_p13 = pnand %p3756_p12, %p3742_p3  ;;  %p3764_p9 = scmp.lt.s32.totalorder %s3762_s4, %s3755_s24 }
  0x47   : > { %p3759_p0 = pneg %p3758_p13  ;;  %p3765_p1 = por %p3764_p9, %p3763_p5 }
  0x49   : > { %p3766_p2 = pnand %p3765_p1, %p3759_p0 }
  0x4b   : > { %3769 = shalt.err (!%p3766_p2)
}
  0x4c   : > { %s3862_s18 = smov 64   ;;  %s3863_s7 = smov 4  }
  0x4d   : > { %3594 = dma.hbm_to_vmem [thread:$0]  (!%p3986_p11), %s3993_s5, 3072, %s3995_s30, %s3997_s6, %s3862_s18, %s3862_s18, %s3863_s7  }
  0x4e   : > { %p5522_p3 = scmp.ne.s32.totalorder %s5517_s21, 0 }
  0x50   : > { %162 = sbr.rel (%p5522_p3) target bundleno = 839 (0x347), region = 28 }
  0x57   : > { %s4028_s8 = sand.u32 1, %s3840_s10   ;;  %p5523_p7 = scmp.ne.s32.totalorder %s5515_s19, 0 }
  0x58   : > { %s3578_s15 = smul.u32 192, %s4028_s8  ;;  %s165_s16 = scalar_lea.sflag [#allocation3], %s4028_s8 }
  0x5a   : > { %s4032_s26 = scalar_lea.vmem [#allocation2], %s3578_s15 }
  0x5b   : > { %3823 = dma.done.wait (%p5523_p7), %s165_s16, 3072  }
  0x5c   : > { %3825 = vsyncadd (%p5523_p7), %s165_s16, 4294964224  ;;  %p5524_p11 = scmp.ne.s32.totalorder %s5513_s17, 0 }
  0x5e   : > { %3827 = dma.done.wait (%p5524_p11), [#allocation6], 160  }
  0x5f   : > { %3829 = vsyncadd (%p5524_p11), [#allocation6], 4294967136  ;;  %vm1209_vm0 = vcmask 1042432   ;;  %vm1210_vm1 = vcmask 1046532   ;;  %vm736_vm2 = vcmask 1041408   ;;  %vm687_vm6 = vcmask 31744  }
  0x60   : > { %vm4042_vm3 = vmor %vm1209_vm0, %vm1210_vm1  ;;  %vm250_vm4 = vsmask.f32 3328  ;;  %vm251_vm5 = vsmask.f32 7440  ;;  %v1325_v1 = vld [vmem:[#allocation5 + $0x4] sm:$0x3] }
  0x61   : > { %v4047_v2 = vld [vmem:[%s4032_s26] sm:$0xf]  ;;  %v4050_v3 = vld [vmem:[%s4032_s26 + $0x4] sm:$0xf]  ;;  %3573 = vmatprep.subr.msk.bf16.mxu0 %vm736_vm2, %v1325_v1  ;;  %v1423_v4 = vsel %vm736_vm2, %v1325_v1, 0  ;;  %vm4088_vm7 = vmor %vm250_vm4, %vm251_vm5  ;;  %vm2156_vm11 = vcmask 1045508  }
  0x62   : > { %v4055_v5 = vld [vmem:[%s4032_s26 + $0x8] sm:$0x3]  ;;  %v2922_v6 = vrot.slane %v4047_v2, 9  ;;  %v1214_v7 = vrot.slane %v4050_v3, 5  ;;  %v254_v8 = vshrl.u32 %v4047_v2, 16  ;;  %3278 = vmatpush3.bf16.msra.mxu0 %v1423_v4  ;;  %v257_v24 = vshll.u32 %v4047_v2, 16  ;;  %vm4947_vm12 = vmor %vm736_vm2, %vm2156_vm11 }
  0x63   : > { %v1217_v9 = vrot.slane %v4055_v5, 5  ;;  %v638_v10 = vld [vmem:[#allocation5 + $0x2] sm:$0x3]  ;;  %v204_v11 = vld [vmem:[%s4032_s26 + $0xc] sm:$0xf]  ;;  %v263_v28 = vshll.u32 %v4050_v3, 16 }
  0x64   : > { %v1215_v12 = vsel %vm4042_vm3, %v2922_v6, %v1214_v7  ;;  %v1216_v13 = vrot.slane %v1214_v7, 4  ;;  %3571 = vmatprep.subr.msk.bf16.mxu1 %vm736_vm2, %v638_v10  ;;  %v205_v14 = vld [vmem:[%s4032_s26 + $0x10] sm:$0xf]  ;;  %v206_v15 = vld [vmem:[%s4032_s26 + $0x14] sm:$0x3]  ;;  %v2923_v16 = vrot.slane %v204_v11, 9 }
  0x65   : > { %v1221_v18 = vrot.slane %v205_v14, 5  ;;  %v1224_v19 = vrot.slane %v206_v15, 5  ;;  %v1645_v20 = vshrl.u32 %v206_v15, 16  ;;  %v738_v22 = vsel %vm736_vm2, %v638_v10, 0  ;;  %v4100_v62 = vld [vmem:[%s4032_s26 + $0x1c] sm:$0xf] }
  0x66   : > { %v1218_v21 = vsel %vm4042_vm3, %v1216_v13, %v1217_v9  ;;  %v256_v23 = vrot.slane %v254_v8, 4  ;;  %3210 = vmatpush3.bf16.msra.mxu1 %v738_v22  ;;  %v259_v29 = vrot.slane %v257_v24, 5  ;;  %v267_v30 = vshrl.u32 %v4050_v3, 16  ;;  %v4107_v7 = vld [vmem:[%s4032_s26 + $0x20] sm:$0x3]  ;;  %s2857_s17 = sshll.u32 %s4028_s8, 1 }
  0x67   : > { %v2938_v25 = vcombine.low %v1215_v12, %v1218_v21  ;;  %v1222_v26 = vsel %vm4042_vm3, %v2923_v16, %v1221_v18  ;;  %v1223_v27 = vrot.slane %v1221_v18, 4  ;;  %v273_v31 = vshll.u32 %v4055_v5, 16  ;;  %v4112_v12 = vld [vmem:[%s4032_s26 + $0x18] sm:$0xf]  ;;  %v4115_v13 = vld [vmem:[%s4032_s26 + $0x28] sm:$0xf] }
  0x68   : > { %v4077_v32 = vrot.slane %v254_v8, 5  ;;  %v265_v34 = vrot.slane %v263_v28, 5  ;;  %v4082_v35 = vrot.slane %v257_v24, 6  ;;  %v4084_v36 = vrot.slane %v263_v28, 6  ;;  %v4138_v28 = vld [vmem:[%s4032_s26 + $0x24] sm:$0xf] }
  0x69   : > { %3279 = vmatprep.mubr.msk.bf16.mxu0 %vm687_vm6, %v2938_v25  ;;  %v1225_v33 = vsel %vm4042_vm3, %v1223_v27, %v1224_v19  ;;  %v260_v38 = vor.u32 %v259_v29, %v256_v23  ;;  %v269_v39 = vrot.slane %v267_v30, 4  ;;  %v275_v40 = vrot.slane %v273_v31, 5  ;;  %v4122_v19 = vld [vmem:[%s4032_s26 + $0x2c] sm:$0x3]  ;;  %v4140_v29 = vld [vmem:[#allocation5 + $0x6] sm:$0x3] }
  0x6a   : > { %v2939_v37 = vcombine.low %v1222_v26, %v1225_v33  ;;  %v4092_v42 = vrot.slane %v267_v30, 5  ;;  %v4094_v43 = vrot.slane %v273_v31, 6  ;;  %v278_v44 = vshrl.u32 %v204_v11, 16  ;;  %3574 = vmatprep.subr.msk.bf16.mxu0 %vm736_vm2, %v4140_v29  ;;  %s192_s19 = scalar_lea.vmem [#allocation7], %s2857_s17  ;;  %s3051_s21 = sshll.u32 %s3848_s12, 5 }
  0x6b   : > { %v281_v45 = vshll.u32 %v204_v11, 16  ;;  %v261_v46 = vrot.slane %v260_v38, 4  ;;  %v270_v47 = vor.u32 %v269_v39, %v265_v34  ;;  %v287_v48 = vshll.u32 %v205_v14, 16  ;;  %s2758_s30 = sshll.u32 %s192_s19, 4  ;;  %s5356_s6 = scalar_lea.hbm %s5407_s2, %s3051_s21  ;;  %s5358_s30 = int_to_ptr.vmem [resolvable:$true] %s2758_s30 }
  0x6c   : > { %3280 = vmatmul.mubr.msk.bf16.vlgmr.msra.gmra.mrb[0].mxu0 %vm687_vm6, %v2939_v37  ;;  %v291_v49 = vshrl.u32 %v205_v14, 16  ;;  %v280_v50 = vrot.slane %v278_v44, 4  ;;  %v297_v52 = vshll.u32 %v206_v15, 16  ;;  %v1636_v53 = vrot.slane %v278_v44, 5  ;;  %s2745_s27 = scalar_lea.sflag [#allocation4], %s4028_s8  ;;  %s3770_s24 = scalar_lea.vmem %s5358_s30, 32 }
  0x6d   : > { %v283_v51 = vrot.slane %v281_v45, 5  ;;  %v266_v54 = vsel %vm4088_vm7, %v261_v46, %v265_v34  ;;  %v271_v55 = vrot.slane %v270_v47, 4  ;;  %v289_v56 = vrot.slane %v287_v48, 5  ;;  %p3771_p4 = scmp.ne.s32.totalorder %s5358_s30, %s3770_s24  ;;  %s3866_s12 = smov [#allocation7]  }
  0x6e   : > { %v293_v57 = vrot.slane %v291_v49, 4  ;;  %v299_v59 = vrot.slane %v297_v52, 5  ;;  %v1637_v60 = vrot.slane %v281_v45, 6  ;;  %v1640_v61 = vrot.slane %v291_v49, 5  ;;  %s3774_s23 = sshll.u32 %s3866_s12, 4  ;;  %s3775_s23 = int_to_ptr.vmem [resolvable:$false] %s3774_s23 }
  0x6f   : > { %v284_v58 = vor.u32 %v283_v51, %v280_v50  ;;  %v276_v63 = vsel %vm4088_vm7, %v271_v55, %v275_v40  ;;  %v1641_v4 = vrot.slane %v287_v48, 6  ;;  %v4104_v6 = vrot.slane %v1645_v20, 5  ;;  %p3772_p6 = pnand %p3771_p4, %p3974_p10  ;;  %s3776_s29 = scalar_lea.vmem %s3775_s23, 64 }
  0x70   : > { %v294_v1 = vor.u32 %v293_v57, %v289_v56  ;;  %v2858_v8 = vcombine.low %v266_v54, %v276_v63  ;;  %v1638_v10 = vor.u32 %v1637_v60, %v1636_v53  ;;  %v4109_v11 = vrot.slane %v297_v52, 6  ;;  %v4180_v63 = vld [vmem:[%s4032_s26 + $0x38] sm:$0x3]  ;;  %p3777_p12 = scmp.lt.s32.totalorder %s5358_s30, %s3775_s23  ;;  %p3778_p13 = scmp.lt.s32.totalorder %s3776_s29, %s3770_s24 }
  0x71   : > { %v285_v9 = vrot.slane %v284_v58, 4  ;;  %v4117_v15 = vor.u32 %v1641_v4, %v1640_v61  ;;  %v2924_v16 = vrot.slane %v4112_v12, 9  ;;  %v1228_v18 = vrot.slane %v4100_v62, 5  ;;  %v4177_v61 = vld [vmem:[%s4032_s26 + $0x34] sm:$0xf]  ;;  %p3773_p8 = pneg %p3772_p6 }
  0x72   : > { %v295_v14 = vrot.slane %v294_v1, 4  ;;  %3211 = vmatprep.mubr.msk.bf16.mxu1 %vm687_vm6, %v2858_v8  ;;  %v4127_v21 = vrot.slane %v1638_v10, 4  ;;  %v1231_v23 = vrot.slane %v4107_v7, 5  ;;  %v2925_v31 = vrot.slane %v4138_v28, 9  ;;  %v4188_v10 = vld [vmem:[%s4032_s26 + $0x3c] sm:$0xf]  ;;  %p3779_p0 = por %p3778_p13, %p3777_p12 }
  0x73   : > { %v290_v20 = vsel %vm4088_vm7, %v285_v9, %v289_v56  ;;  %v1229_v26 = vsel %vm4042_vm3, %v2924_v16, %v1228_v18  ;;  %v1230_v27 = vrot.slane %v1228_v18, 4  ;;  %v1235_v33 = vrot.slane %v4115_v13, 5  ;;  %v4171_v56 = vld [vmem:[%s4032_s26 + $0x30] sm:$0xf] }
  0x74   : > { %v300_v24 = vsel %vm4088_vm7, %v295_v14, %v299_v59  ;;  %v1238_v34 = vrot.slane %v4122_v19, 5  ;;  %v5441_v38 = vshrl.u32 %v4112_v12, 16  ;;  %v5439_v39 = vshll.u32 %v4112_v12, 16  ;;  %p3780_p5 = pnand %p3779_p0, %p3773_p8 }
  0x75   : > { %v2859_v30 = vcombine.low %v290_v20, %v300_v24  ;;  %v1232_v37 = vsel %vm4042_vm3, %v1230_v27, %v1231_v23  ;;  %v5435_v40 = vshll.u32 %v4100_v62, 16  ;;  %v1236_v45 = vsel %vm4042_vm3, %v2925_v31, %v1235_v33  ;;  %v4196_v23 = vld [vmem:[%s4032_s26 + $0x40] sm:$0xf]  ;;  %v4202_v31 = vld [vmem:[%s4032_s26 + $0x44] sm:$0x3] }
  0x76   : > { %v2940_v44 = vcombine.low %v1229_v26, %v1232_v37  ;;  %v1237_v46 = vrot.slane %v1235_v33, 4  ;;  %v5437_v47 = vshrl.u32 %v4100_v62, 16  ;;  %v304_v48 = vrot.slane %v5441_v38, 4 }
  0x77   : > { %3212 = vmatmul.mubr.msk.bf16.vlgmr.msra.gmra.mrb[0].mxu1 %vm687_vm6, %v2859_v30  ;;  %v307_v49 = vrot.slane %v5439_v39, 5  ;;  %v313_v50 = vrot.slane %v5435_v40, 5  ;;  %v5427_v51 = vshll.u32 %v4107_v7, 16  ;;  %v5426_v54 = vshrl.u32 %v4138_v28, 16 }
  0x78   : > { %3283 = vmatprep.mubr.msk.bf16.mxu0 %vm687_vm6, %v2940_v44  ;;  %v1239_v52 = vsel %vm4042_vm3, %v1237_v46, %v1238_v34  ;;  %v317_v53 = vrot.slane %v5437_v47, 4  ;;  %v5425_v55 = vshll.u32 %v4138_v28, 16  ;;  %v5423_v60 = vshll.u32 %v4115_v13, 16 }
  0x79   : > { %v2941_v57 = vcombine.low %v1236_v45, %v1239_v52  ;;  %v308_v58 = vor.u32 %v307_v49, %v304_v48  ;;  %v323_v59 = vrot.slane %v5427_v51, 5  ;;  %v328_v4 = vrot.slane %v5426_v54, 4 }
  0x7a   : > { %v318_v1 = vor.u32 %v317_v53, %v313_v50  ;;  %v331_v8 = vrot.slane %v5425_v55, 5  ;;  %v5424_v9 = vshrl.u32 %v4115_v13, 16  ;;  %v337_v16 = vrot.slane %v5423_v60, 5 }
  0x7b   : > { %3284 = vmatmul.mubr.msk.bf16.gmra.mrb[4].mxu0 %vm687_vm6, %v2941_v57  ;;  %v309_v14 = vrot.slane %v308_v58, 4  ;;  %v5421_v18 = vshll.u32 %v4122_v19, 16  ;;  %v2926_v20 = vrot.slane %v4171_v56, 9  ;;  %v1242_v30 = vrot.slane %v4177_v61, 5 }
  0x7c   : > { %v319_v24 = vrot.slane %v318_v1, 4  ;;  %v332_v26 = vor.u32 %v331_v8, %v328_v4  ;;  %v341_v27 = vrot.slane %v5424_v9, 4  ;;  %v1245_v37 = vrot.slane %v4180_v63, 5 }
  0x7d   : > { %v314_v33 = vsel %vm4088_vm7, %v309_v14, %v313_v50  ;;  %v347_v34 = vrot.slane %v5421_v18, 5  ;;  %v2927_v44 = vrot.slane %v4188_v10, 9  ;;  %v1243_v49 = vsel %vm4042_vm3, %v2926_v20, %v1242_v30 }
  0x7e   : > { %v324_v45 = vsel %vm4088_vm7, %v319_v24, %v323_v59  ;;  %v333_v46 = vrot.slane %v332_v26, 4  ;;  %v342_v48 = vor.u32 %v341_v27, %v337_v16  ;;  %v1244_v53 = vrot.slane %v1242_v30, 4 }
  0x7f   : > { %v2860_v52 = vcombine.low %v314_v33, %v324_v45  ;;  %v1249_v57 = vrot.slane %v4196_v23, 5  ;;  %v1252_v50 = vrot.slane %v4202_v31, 5  ;;  %v5419_v4 = vshrl.u32 %v4171_v56, 16 }
  0x80   : > { %v338_v58 = vsel %vm4088_vm7, %v333_v46, %v337_v16  ;;  %v343_v1 = vrot.slane %v342_v48, 4  ;;  %v5417_v8 = vshll.u32 %v4171_v56, 16  ;;  %v1246_v59 = vsel %vm4042_vm3, %v1244_v53, %v1245_v37  ;;  %v4237_v46 = vld [vmem:[#allocation5] sm:$0x3] }
  0x81   : > { %3215 = vmatprep.mubr.msk.bf16.mxu1 %vm687_vm6, %v2860_v52  ;;  %v1250_v14 = vsel %vm4042_vm3, %v2927_v44, %v1249_v57  ;;  %v1251_v20 = vrot.slane %v1249_v57, 4  ;;  %v5414_v24 = vshll.u32 %v4177_v61, 16  ;;  %v2942_v16 = vcombine.low %v1243_v49, %v1246_v59  ;;  %3572 = vmatprep.subr.msk.bf16.mxu1 %vm736_vm2, %v4237_v46  ;;  %v4254_v59 = vld [vmem:[%s4032_s26 + $0x4c] sm:$0xf] }
  0x82   : > { %v348_v26 = vsel %vm4088_vm7, %v343_v1, %v347_v34  ;;  %v352_v27 = vrot.slane %v5419_v4, 4  ;;  %v355_v30 = vrot.slane %v5417_v8, 5  ;;  %v5415_v45 = vshrl.u32 %v4177_v61, 16  ;;  %v4251_v1 = vld [vmem:[%s4032_s26 + $0x48] sm:$0xf] }
  0x83   : > { %v2861_v33 = vcombine.low %v338_v58, %v348_v26  ;;  %v1253_v37 = vsel %vm4042_vm3, %v1251_v20, %v1252_v50  ;;  %v361_v44 = vrot.slane %v5414_v24, 5  ;;  %3287 = vmatprep.mubr.msk.bf16.mxu0 %vm687_vm6, %v2942_v16  ;;  %v5413_v49 = vshll.u32 %v4180_v63, 16 }
  0x84   : > { %v2943_v34 = vcombine.low %v1250_v14, %v1253_v37  ;;  %v356_v48 = vor.u32 %v355_v30, %v352_v27  ;;  %v5412_v52 = vshrl.u32 %v4188_v10, 16  ;;  %v365_v53 = vrot.slane %v5415_v45, 4  ;;  %v4263_v27 = vld [vmem:[%s4032_s26 + $0x50] sm:$0x3]  ;;  %v4281_v45 = vld [vmem:[%s4032_s26 + $0x5c] sm:$0x3] }
  0x85   : > { %3216 = vmatmul.mubr.msk.bf16.gmra.mrb[4].mxu1 %vm687_vm6, %v2861_v33  ;;  %v5416_v57 = vshll.u32 %v4188_v10, 16  ;;  %v5418_v50 = vshll.u32 %v4196_v23, 16  ;;  %v5420_v58 = vshrl.u32 %v4196_v23, 16  ;;  %v371_v20 = vrot.slane %v5413_v49, 5 }
  0x86   : > { %3288 = vmatmul.mubr.msk.bf16.gmra.mrb[8].mxu0 %vm687_vm6, %v2943_v34  ;;  %v357_v14 = vrot.slane %v356_v48, 4  ;;  %v376_v26 = vrot.slane %v5412_v52, 4  ;;  %v5422_v16 = vshll.u32 %v4202_v31, 16  ;;  %v366_v30 = vor.u32 %v365_v53, %v361_v44  ;;  %v4272_v48 = vld [vmem:[%s4032_s26 + $0x58] sm:$0xf] }
  0x87   : > { %v379_v33 = vrot.slane %v5416_v57, 5  ;;  %v385_v37 = vrot.slane %v5418_v50, 5  ;;  %v389_v34 = vrot.slane %v5420_v58, 4  ;;  %v2928_v24 = vrot.slane %v4251_v1, 9  ;;  %v4285_v58 = vld [vmem:[%s4032_s26 + $0x54] sm:$0xf] }
  0x88   : > { %v362_v52 = vsel %vm4088_vm7, %v357_v14, %v361_v44  ;;  %v395_v49 = vrot.slane %v5422_v16, 5  ;;  %v1256_v53 = vrot.slane %v4254_v59, 5  ;;  %v367_v57 = vrot.slane %v366_v30, 4 }
  0x89   : > { %v380_v8 = vor.u32 %v379_v33, %v376_v26  ;;  %v390_v50 = vor.u32 %v389_v34, %v385_v37  ;;  %v1259_v4 = vrot.slane %v4263_v27, 5  ;;  %v2929_v14 = vrot.slane %v4285_v58, 9 }
  0x8a   : > { %v1257_v18 = vsel %vm4042_vm3, %v2928_v24, %v1256_v53  ;;  %v1258_v44 = vrot.slane %v1256_v53, 4  ;;  %v1263_v16 = vrot.slane %v4272_v48, 5  ;;  %v372_v60 = vsel %vm4088_vm7, %v367_v57, %v371_v20 }
  0x8b   : > { %v381_v9 = vrot.slane %v380_v8, 4  ;;  %v391_v55 = vrot.slane %v390_v50, 4  ;;  %v1266_v26 = vrot.slane %v4281_v45, 5  ;;  %v2862_v30 = vcombine.low %v362_v52, %v372_v60 }
  0x8c   : > { %v1260_v33 = vsel %vm4042_vm3, %v1258_v44, %v1259_v4  ;;  %v1264_v34 = vsel %vm4042_vm3, %v2929_v14, %v1263_v16  ;;  %v1265_v24 = vrot.slane %v1263_v16, 4  ;;  %v5434_v8 = vshrl.u32 %v4251_v1, 16  ;;  %v4321_v16 = vld [vmem:[%s4032_s26 + $0x60] sm:$0xf] }
  0x8d   : > { %v386_v53 = vsel %vm4088_vm7, %v381_v9, %v385_v37  ;;  %v396_v54 = vsel %vm4088_vm7, %v391_v55, %v395_v49  ;;  %v2944_v51 = vcombine.low %v1257_v18, %v1260_v33  ;;  %3219 = vmatprep.mubr.msk.bf16.mxu1 %vm687_vm6, %v2862_v30  ;;  %v5433_v52 = vshll.u32 %v4251_v1, 16  ;;  %v4324_v37 = vld [vmem:[%s4032_s26 + $0x64] sm:$0xf]  ;;  %v4334_v33 = vld [vmem:[%s4032_s26 + $0x68] sm:$0x3] }
  0x8e   : > { %v2863_v60 = vcombine.low %v386_v53, %v396_v54  ;;  %v1267_v4 = vsel %vm4042_vm3, %v1265_v24, %v1266_v26  ;;  %v5429_v57 = vshll.u32 %v4254_v59, 16  ;;  %v400_v55 = vrot.slane %v5434_v8, 4  ;;  %5529 = vst [vmem:[#allocation11_spill] sm:$0xff] %v4334_v33  ;;  %v4356_v8 = vld [vmem:[%s4032_s26 + $0x74] sm:$0x3] }
  0x8f   : > { %3291 = vmatprep.mubr.msk.bf16.mxu0 %vm687_vm6, %v2944_v51  ;;  %v2945_v9 = vcombine.low %v1264_v34, %v1267_v4  ;;  %v5430_v18 = vshrl.u32 %v4254_v59, 16  ;;  %v5428_v49 = vshll.u32 %v4263_v27, 16  ;;  %v403_v54 = vrot.slane %v5433_v52, 5  ;;  %v4342_v4 = vld [vmem:[%s4032_s26 + $0x6c] sm:$0xf]  ;;  %5532 = vst [vmem:[#allocation14_spill] sm:$0xff] %v4356_v8 }
  0x90   : > { %3220 = vmatmul.mubr.msk.bf16.gmra.mrb[8].mxu1 %vm687_vm6, %v2863_v60  ;;  %v409_v50 = vrot.slane %v5429_v57, 5  ;;  %v5431_v51 = vshrl.u32 %v4285_v58, 16  ;;  %v5432_v20 = vshll.u32 %v4285_v58, 16  ;;  %v5436_v26 = vshll.u32 %v4272_v48, 16  ;;  %5530 = vst [vmem:[#allocation12_spill] sm:$0xff] %v4342_v4 }
  0x91   : > { %3292 = vmatmul.mubr.msk.bf16.gmra.mrb[12].mxu0 %vm687_vm6, %v2945_v9  ;;  %v413_v44 = vrot.slane %v5430_v18, 4  ;;  %v419_v14 = vrot.slane %v5428_v49, 5  ;;  %v5438_v30 = vshrl.u32 %v4272_v48, 16  ;;  %v404_v34 = vor.u32 %v403_v54, %v400_v55  ;;  %v4350_v55 = vld [vmem:[%s4032_s26 + $0x70] sm:$0xf] }
  0x92   : > { %v424_v24 = vrot.slane %v5431_v51, 4  ;;  %v427_v53 = vrot.slane %v5432_v20, 5  ;;  %v5440_v60 = vshll.u32 %v4281_v45, 16  ;;  %v433_v49 = vrot.slane %v5436_v26, 5  ;;  %5531 = vst [vmem:[#allocation13_spill] sm:$0xff] %v4350_v55 }
  0x93   : > { %v414_v9 = vor.u32 %v413_v44, %v409_v50  ;;  %v437_v57 = vrot.slane %v5438_v30, 4  ;;  %v2930_v18 = vrot.slane %v4321_v16, 9  ;;  %v405_v54 = vrot.slane %v404_v34, 4 }
  0x94   : > { %v428_v51 = vor.u32 %v427_v53, %v424_v24  ;;  %v443_v20 = vrot.slane %v5440_v60, 5  ;;  %v1270_v52 = vrot.slane %v4324_v37, 5  ;;  %v1273_v26 = vrot.slane %v4334_v33, 5 }
  0x95   : > { %v415_v44 = vrot.slane %v414_v9, 4  ;;  %v438_v40 = vor.u32 %v437_v57, %v433_v49  ;;  %v2931_v47 = vrot.slane %v4342_v4, 9  ;;  %v410_v30 = vsel %vm4088_vm7, %v405_v54, %v409_v50  ;;  %v4368_v9 = vld [vmem:[#allocation5 + $0x8] sm:$0x3] }
  0x96   : > { %v429_v39 = vrot.slane %v428_v51, 4  ;;  %v1271_v34 = vsel %vm4042_vm3, %v2930_v18, %v1270_v52  ;;  %v1272_v24 = vrot.slane %v1270_v52, 4  ;;  %v1277_v38 = vrot.slane %v4350_v55, 5  ;;  %5533 = vst [vmem:[#allocation15_spill] sm:$0xff] %v4368_v9 }
  0x97   : > { %v420_v53 = vsel %vm4088_vm7, %v415_v44, %v419_v14  ;;  %v439_v60 = vrot.slane %v438_v40, 4  ;;  %v1280_v57 = vrot.slane %v4356_v8, 5  ;;  %v1960_v52 = vsel %vm736_vm2, %v4140_v29, 0  ;;  %v4400_v44 = vld [vmem:[%s4032_s26 + $0x7c] sm:$0xf] }
  0x98   : > { %v2864_v25 = vcombine.low %v410_v30, %v420_v53  ;;  %v434_v22 = vsel %vm4088_vm7, %v429_v39, %v433_v49  ;;  %v1274_v50 = vsel %vm4042_vm3, %v1272_v24, %v1273_v26  ;;  %v1278_v51 = vsel %vm4042_vm3, %v2931_v47, %v1277_v38  ;;  %3312 = vmatpush3.bf16.msra.mxu0 %v1960_v52 }
  0x99   : > { %v444_v18 = vsel %vm4088_vm7, %v439_v60, %v443_v20  ;;  %v2946_v40 = vcombine.low %v1271_v34, %v1274_v50  ;;  %v1279_v14 = vrot.slane %v1277_v38, 4  ;;  %v5448_v39 = vshrl.u32 %v4321_v16, 16  ;;  %3575 = vmatprep.subr.msk.bf16.mxu0 %vm736_vm2, %v4368_v9  ;;  %5534 = vst [vmem:[#allocation16_spill] sm:$0xff] %v4400_v44  ;;  %v4410_v50 = vld [vmem:[%s4032_s26 + $0x78] sm:$0xf] }
  0x9a   : > { %3223 = vmatprep.mubr.msk.bf16.mxu1 %vm687_vm6, %v2864_v25  ;;  %v2865_v30 = vcombine.low %v434_v22, %v444_v18  ;;  %v5446_v49 = vshll.u32 %v4321_v16, 16  ;;  %v5444_v26 = vshll.u32 %v4324_v37, 16  ;;  %v5445_v38 = vshrl.u32 %v4324_v37, 16  ;;  %5535 = vst [vmem:[#allocation17_spill] sm:$0xff] %v4410_v50  ;;  %v4438_v9 = vld [vmem:[%s4032_s26 + $0x84] sm:$0xf] }
  0x9b   : > { %3295 = vmatprep.mubr.msk.bf16.mxu0 %vm687_vm6, %v2946_v40  ;;  %v1281_v29 = vsel %vm4042_vm3, %v1279_v14, %v1280_v57  ;;  %v5443_v25 = vshll.u32 %v4334_v33, 16  ;;  %v5442_v22 = vshrl.u32 %v4342_v4, 16  ;;  %v448_v20 = vrot.slane %v5448_v39, 4  ;;  %v4417_v14 = vld [vmem:[%s4032_s26 + $0x80] sm:$0x3]  ;;  %5539 = vst [vmem:[#allocation21_spill] sm:$0xff] %v4438_v9 }
  0x9c   : > { %3224 = vmatmul.mubr.msk.bf16.gmra.mrb[12].mxu1 %vm687_vm6, %v2865_v30  ;;  %v2947_v47 = vcombine.low %v1278_v51, %v1281_v29  ;;  %v451_v60 = vrot.slane %v5446_v49, 5  ;;  %v457_v54 = vrot.slane %v5444_v26, 5  ;;  %v461_v34 = vrot.slane %v5445_v38, 4  ;;  %5536 = vst [vmem:[#allocation18_spill] sm:$0xff] %v4417_v14  ;;  %v4424_v26 = vld [vmem:[%s4032_s26 + $0x88] sm:$0xf] }
  0x9d   : > { %v467_v24 = vrot.slane %v5443_v25, 5  ;;  %v472_v53 = vrot.slane %v5442_v22, 4  ;;  %v5447_v57 = vshll.u32 %v4342_v4, 16  ;;  %v5450_v18 = vshll.u32 %v4350_v55, 16  ;;  %5537 = vst [vmem:[#allocation19_spill] sm:$0xff] %v4424_v26 }
  0x9e   : > { %3296 = vmatmul.mubr.msk.bf16.gmra.mrb[16].mxu0 %vm687_vm6, %v2947_v47  ;;  %v452_v52 = vor.u32 %v451_v60, %v448_v20  ;;  %v5453_v40 = vshrl.u32 %v4350_v55, 16  ;;  %v5454_v51 = vshll.u32 %v4356_v8, 16  ;;  %v462_v30 = vor.u32 %v461_v34, %v457_v54  ;;  %v4433_v34 = vld [vmem:[%s4032_s26 + $0x8c] sm:$0x3] }
  0x9f   : > { %v475_v29 = vrot.slane %v5447_v57, 5  ;;  %v2932_v22 = vrot.slane %v4410_v50, 9  ;;  %v1284_v25 = vrot.slane %v4400_v44, 5  ;;  %v481_v20 = vrot.slane %v5450_v18, 5  ;;  %5538 = vst [vmem:[#allocation20_spill] sm:$0xff] %v4433_v34 }
  0xa0   : > { %v453_v47 = vrot.slane %v452_v52, 4  ;;  %v485_v60 = vrot.slane %v5453_v40, 4  ;;  %v491_v38 = vrot.slane %v5454_v51, 5  ;;  %v463_v49 = vrot.slane %v462_v30, 4 }
  0xa1   : > { %v476_v57 = vor.u32 %v475_v29, %v472_v53  ;;  %v1285_v39 = vsel %vm4042_vm3, %v2932_v22, %v1284_v25  ;;  %v1286_v17 = vrot.slane %v1284_v25, 4  ;;  %v1287_v55 = vrot.slane %v4417_v14, 5 }
  0xa2   : > { %v458_v52 = vsel %vm4088_vm7, %v453_v47, %v457_v54  ;;  %v486_v18 = vor.u32 %v485_v60, %v481_v20  ;;  %v2933_v40 = vrot.slane %v4438_v9, 9  ;;  %v468_v51 = vsel %vm4088_vm7, %v463_v49, %v467_v24 }
  0xa3   : > { %v477_v8 = vrot.slane %v476_v57, 4  ;;  %v1291_v53 = vrot.slane %v4424_v26, 5  ;;  %v1294_v30 = vrot.slane %v4433_v34, 5  ;;  %v2866_v22 = vcombine.low %v458_v52, %v468_v51 }
  0xa4   : > { %v487_v25 = vrot.slane %v486_v18, 4  ;;  %v1288_v29 = vsel %vm4042_vm3, %v1286_v17, %v1287_v55  ;;  %v5464_v54 = vshrl.u32 %v4410_v50, 16  ;;  %v5462_v55 = vshll.u32 %v4410_v50, 16 }
  0xa5   : > { %v482_v47 = vsel %vm4088_vm7, %v477_v8, %v481_v20  ;;  %v2948_v60 = vcombine.low %v1285_v39, %v1288_v29  ;;  %v1292_v4 = vsel %vm4042_vm3, %v2933_v40, %v1291_v53  ;;  %v1293_v49 = vrot.slane %v1291_v53, 4  ;;  %3227 = vmatprep.mubr.msk.bf16.mxu1 %vm687_vm6, %v2866_v22  ;;  %v4473_v53 = vld [vmem:[%s4032_s26 + $0x90] sm:$0xf]  ;;  %v4476_v22 = vld [vmem:[%s4032_s26 + $0x94] sm:$0xf] }
  0xa6   : > { %v492_v24 = vsel %vm4088_vm7, %v487_v25, %v491_v38  ;;  %v496_v17 = vrot.slane %v5464_v54, 4  ;;  %v5460_v57 = vshll.u32 %v4400_v44, 16  ;;  %v5461_v18 = vshrl.u32 %v4400_v44, 16  ;;  %5540 = vst [vmem:[#allocation22_spill] sm:$0xff] %v4473_v53  ;;  %5541 = vst [vmem:[#allocation23_spill] sm:$0xff] %v4476_v22 }
  0xa7   : > { %v2867_v8 = vcombine.low %v482_v47, %v492_v24  ;;  %3299 = vmatprep.mubr.msk.bf16.mxu0 %vm687_vm6, %v2948_v60  ;;  %v1295_v39 = vsel %vm4042_vm3, %v1293_v49, %v1294_v30  ;;  %v5459_v40 = vshll.u32 %v4417_v14, 16  ;;  %v499_v38 = vrot.slane %v5462_v55, 5  ;;  %v4486_v47 = vld [vmem:[%s4032_s26 + $0x98] sm:$0x3] }
  0xa8   : > { %v2949_v51 = vcombine.low %v1292_v4, %v1295_v39  ;;  %v505_v20 = vrot.slane %v5460_v57, 5  ;;  %v5463_v52 = vshrl.u32 %v4438_v9, 16  ;;  %v509_v30 = vrot.slane %v5461_v18, 4  ;;  %5542 = vst [vmem:[#allocation24_spill] sm:$0xff] %v4486_v47  ;;  %v4494_v39 = vld [vmem:[%s4032_s26 + $0x9c] sm:$0xf] }
  0xa9   : > { %3228 = vmatmul.mubr.msk.bf16.gmra.mrb[16].mxu1 %vm687_vm6, %v2867_v8  ;;  %v515_v4 = vrot.slane %v5459_v40, 5  ;;  %v5467_v25 = vshll.u32 %v4438_v9, 16  ;;  %v5470_v29 = vshll.u32 %v4424_v26, 16  ;;  %v500_v60 = vor.u32 %v499_v38, %v496_v17  ;;  %5543 = vst [vmem:[#allocation25_spill] sm:$0xff] %v4494_v39 }
  0xaa   : > { %3300 = vmatmul.mubr.msk.bf16.gmra.mrb[20].mxu0 %vm687_vm6, %v2949_v51  ;;  %v520_v49 = vrot.slane %v5463_v52, 4  ;;  %v5473_v24 = vshrl.u32 %v4424_v26, 16  ;;  %v5476_v8 = vshll.u32 %v4433_v34, 16  ;;  %v510_v40 = vor.u32 %v509_v30, %v505_v20  ;;  %v4502_v51 = vld [vmem:[%s4032_s26 + $0xa0] sm:$0xf] }
  0xab   : > { %v523_v57 = vrot.slane %v5467_v25, 5  ;;  %v529_v18 = vrot.slane %v5470_v29, 5  ;;  %v2934_v55 = vrot.slane %v4473_v53, 9  ;;  %5544 = vst [vmem:[#allocation26_spill] sm:$0xff] %v4502_v51  ;;  %v501_v17 = vrot.slane %v500_v60, 4 }
  0xac   : > { %v533_v38 = vrot.slane %v5473_v24, 4  ;;  %v539_v52 = vrot.slane %v5476_v8, 5  ;;  %v1298_v54 = vrot.slane %v4476_v22, 5  ;;  %v4510_v30 = vld [vmem:[%s4032_s26 + $0xa4] sm:$0x3]  ;;  %v511_v9 = vrot.slane %v510_v40, 4 }
  0xad   : > { %5545 = vst [vmem:[#allocation27_spill] sm:$0xff] %v4510_v30  ;;  %v524_v25 = vor.u32 %v523_v57, %v520_v49  ;;  %v1301_v14 = vrot.slane %v4486_v47, 5  ;;  %v2935_v29 = vrot.slane %v4494_v39, 9  ;;  %v506_v44 = vsel %vm4088_vm7, %v501_v17, %v505_v20 }
  0xae   : > { %v534_v60 = vor.u32 %v533_v38, %v529_v18  ;;  %v1299_v24 = vsel %vm4042_vm3, %v2934_v55, %v1298_v54  ;;  %v1300_v26 = vrot.slane %v1298_v54, 4  ;;  %v516_v8 = vsel %vm4088_vm7, %v511_v9, %v515_v4  ;;  %v4550_v38 = vld [vmem:[%s4032_s26 + $0xac] sm:$0xf] }
  0xaf   : > { %v525_v34 = vrot.slane %v524_v25, 4  ;;  %v1305_v50 = vrot.slane %v4502_v51, 5  ;;  %v1308_v57 = vrot.slane %v4510_v30, 5  ;;  %v2868_v40 = vcombine.low %v506_v44, %v516_v8  ;;  %v4547_v8 = vld [vmem:[%s4032_s26 + $0xa8] sm:$0xf] }
  0xb0   : > { %v535_v49 = vrot.slane %v534_v60, 4  ;;  %v1302_v33 = vsel %vm4042_vm3, %v1300_v26, %v1301_v14  ;;  %v5489_v20 = vshrl.u32 %v4473_v53, 16  ;;  %v5487_v14 = vshll.u32 %v4473_v53, 16 }
  0xb1   : > { %v530_v17 = vsel %vm4088_vm7, %v525_v34, %v529_v18  ;;  %v2950_v55 = vcombine.low %v1299_v24, %v1302_v33  ;;  %v1306_v54 = vsel %vm4042_vm3, %v2935_v29, %v1305_v50  ;;  %v1307_v9 = vrot.slane %v1305_v50, 4  ;;  %3231 = vmatprep.mubr.msk.bf16.mxu1 %vm687_vm6, %v2868_v40 }
  0xb2   : > { %v540_v44 = vsel %vm4088_vm7, %v535_v49, %v539_v52  ;;  %v544_v26 = vrot.slane %v5489_v20, 4  ;;  %v5484_v4 = vshll.u32 %v4476_v22, 16  ;;  %v5485_v50 = vshrl.u32 %v4476_v22, 16 }
  0xb3   : > { %v2869_v34 = vcombine.low %v530_v17, %v540_v44  ;;  %3303 = vmatprep.mubr.msk.bf16.mxu0 %vm687_vm6, %v2950_v55  ;;  %v1309_v33 = vsel %vm4042_vm3, %v1307_v9, %v1308_v57  ;;  %v5483_v18 = vshll.u32 %v4486_v47, 16  ;;  %v547_v52 = vrot.slane %v5487_v14, 5  ;;  %v4560_v17 = vld [vmem:[%s4032_s26 + $0xb0] sm:$0x3] }
  0xb4   : > { %v2951_v25 = vcombine.low %v1306_v54, %v1309_v33  ;;  %v553_v29 = vrot.slane %v5484_v4, 5  ;;  %v5486_v24 = vshrl.u32 %v4494_v39, 16  ;;  %v557_v60 = vrot.slane %v5485_v50, 4 }
  0xb5   : > { %3232 = vmatmul.mubr.msk.bf16.gmra.mrb[20].mxu1 %vm687_vm6, %v2869_v34  ;;  %v563_v57 = vrot.slane %v5483_v18, 5  ;;  %v5488_v40 = vshll.u32 %v4494_v39, 16  ;;  %v5490_v49 = vshll.u32 %v4502_v51, 16  ;;  %v548_v55 = vor.u32 %v547_v52, %v544_v26  ;;  %v4568_v34 = vld [vmem:[%s4032_s26 + $0xb4] sm:$0xf] }
  0xb6   : > { %3304 = vmatmul.mubr.msk.bf16.gmra.mrb[24].mxu0 %vm687_vm6, %v2951_v25  ;;  %v568_v54 = vrot.slane %v5486_v24, 4  ;;  %v5495_v9 = vshrl.u32 %v4502_v51, 16  ;;  %v5496_v44 = vshll.u32 %v4510_v30, 16  ;;  %v558_v33 = vor.u32 %v557_v60, %v553_v29  ;;  %v4576_v25 = vld [vmem:[%s4032_s26 + $0xb8] sm:$0xf] }
  0xb7   : > { %v571_v18 = vrot.slane %v5488_v40, 5  ;;  %v577_v4 = vrot.slane %v5490_v49, 5  ;;  %v2936_v50 = vrot.slane %v4547_v8, 9  ;;  %v549_v26 = vrot.slane %v548_v55, 4  ;;  %v4584_v60 = vld [vmem:[%s4032_s26 + $0xbc] sm:$0x3] }
  0xb8   : > { %v581_v52 = vrot.slane %v5495_v9, 4  ;;  %v587_v24 = vrot.slane %v5496_v44, 5  ;;  %v1312_v14 = vrot.slane %v4550_v38, 5  ;;  %vm1618_vm8 = vsmask.f32 2304 }
  0xb9   : > { %vm1619_vm9 = vsmask.f32 6416  ;;  %v559_v40 = vrot.slane %v558_v33, 4  ;;  %v572_v20 = vor.u32 %v571_v18, %v568_v54  ;;  %v1315_v49 = vrot.slane %v4560_v17, 5 }
  0xba   : > { %v2937_v39 = vrot.slane %v4568_v34, 9  ;;  %v554_v55 = vsel %vm4088_vm7, %v549_v26, %v553_v29  ;;  %v582_v51 = vor.u32 %v581_v52, %v577_v4  ;;  %v1313_v9 = vsel %vm4042_vm3, %v2936_v50, %v1312_v14  ;;  %vm4638_vm10 = vmor %vm1618_vm8, %vm1619_vm9 }
  0xbb   : > { %v1314_v44 = vrot.slane %v1312_v14, 4  ;;  %v564_v30 = vsel %vm4088_vm7, %v559_v40, %v563_v57  ;;  %v573_v47 = vrot.slane %v572_v20, 4  ;;  %v1319_v22 = vrot.slane %v4576_v25, 5 }
  0xbc   : > { %v1322_v18 = vrot.slane %v4584_v60, 5  ;;  %v2870_v54 = vcombine.low %v554_v55, %v564_v30  ;;  %v583_v33 = vrot.slane %v582_v51, 4  ;;  %v590_v29 = vshrl.u32 %v4547_v8, 16 }
  0xbd   : > { %v1316_v53 = vsel %vm4042_vm3, %v1314_v44, %v1315_v49  ;;  %v578_v26 = vsel %vm4088_vm7, %v573_v47, %v577_v4  ;;  %v1320_v14 = vsel %vm4042_vm3, %v2937_v39, %v1319_v22  ;;  %v1321_v57 = vrot.slane %v1319_v22, 4 }
  0xbe   : > { %v2952_v50 = vcombine.low %v1313_v9, %v1316_v53  ;;  %3235 = vmatprep.mubr.msk.bf16.mxu1 %vm687_vm6, %v2870_v54  ;;  %v588_v20 = vsel %vm4088_vm7, %v583_v33, %v587_v24  ;;  %v592_v51 = vrot.slane %v590_v29, 4  ;;  %v593_v30 = vshll.u32 %v4547_v8, 16 }
  0xbf   : > { %v5509_v40 = vshll.u32 %v4550_v38, 16  ;;  %v2871_v49 = vcombine.low %v578_v26, %v588_v20  ;;  %v1323_v53 = vsel %vm4042_vm3, %v1321_v57, %v1322_v18  ;;  %v603_v22 = vshrl.u32 %v4550_v38, 16 }
  0xc0   : > { %3307 = vmatprep.mubr.msk.bf16.mxu0 %vm687_vm6, %v2952_v50  ;;  %v5508_v47 = vshll.u32 %v4560_v17, 16  ;;  %v2953_v39 = vcombine.low %v1320_v14, %v1323_v53  ;;  %v595_v4 = vrot.slane %v593_v30, 5  ;;  %v5507_v9 = vshrl.u32 %v4568_v34, 16 }
  0xc1   : > { %v601_v24 = vrot.slane %v5509_v40, 5  ;;  %3236 = vmatmul.mubr.msk.bf16.gmra.mrb[24].mxu1 %vm687_vm6, %v2871_v49  ;;  %v605_v44 = vrot.slane %v603_v22, 4  ;;  %v5506_v52 = vshll.u32 %v4568_v34, 16  ;;  %v5505_v55 = vshll.u32 %v4576_v25, 16 }
  0xc2   : > { %v611_v0 = vrot.slane %v5508_v47, 5  ;;  %3308 = vmatmul.mubr.msk.bf16.gmra.mrb[28].mxu0 %vm687_vm6, %v2953_v39  ;;  %v596_v18 = vor.u32 %v595_v4, %v592_v51  ;;  %v616_v54 = vrot.slane %v5507_v9, 4  ;;  %v627_v33 = vshrl.u32 %v4576_v25, 16 }
  0xc3   : > { %v5510_v26 = vshll.u32 %v4584_v60, 16  ;;  %v606_v50 = vor.u32 %v605_v44, %v601_v24  ;;  %v619_v14 = vrot.slane %v5506_v52, 5  ;;  %v625_v57 = vrot.slane %v5505_v55, 5 }
  0xc4   : > { %v1623_v51 = vor.u32 %v4082_v35, %v4077_v32  ;;  %v597_v49 = vrot.slane %v596_v18, 4  ;;  %v629_v53 = vrot.slane %v627_v33, 4  ;;  %v1627_v4 = vor.u32 %v4084_v36, %v4092_v42 }
  0xc5   : > { %v635_v39 = vrot.slane %v5510_v26, 5  ;;  %v607_v44 = vrot.slane %v606_v50, 4  ;;  %v620_v55 = vor.u32 %v619_v14, %v616_v54  ;;  %v5548_v9 = vshrl.u32 %v4055_v5, 16 }
  0xc6   : > { %v1624_v52 = vrot.slane %v1623_v51, 4  ;;  %v602_v40 = vsel %vm4088_vm7, %v597_v49, %v601_v24  ;;  %v630_v32 = vor.u32 %v629_v53, %v625_v57  ;;  %v1629_v35 = vrot.slane %v1627_v4, 4 }
  0xc7   : > { %v1632_v47 = vrot.slane %v5548_v9, 5  ;;  %v1643_v18 = vsel %vm4638_vm10, %v4127_v21, %v4117_v15  ;;  %v612_v26 = vsel %vm4088_vm7, %v607_v44, %v611_v0  ;;  %v621_v36 = vrot.slane %v620_v55, 4 }
  0xc8   : > { %v1628_v42 = vsel %vm4638_vm10, %v1624_v52, %v1627_v4  ;;  %v2872_v9 = vcombine.low %v602_v40, %v612_v26  ;;  %v631_v54 = vrot.slane %v630_v32, 4  ;;  %v5549_v24 = vor.u32 %v4109_v11, %v4104_v6 }
  0xc9   : > { %v1634_v5 = vor.u32 %v4094_v43, %v1632_v47  ;;  %v5550_v50 = vrot.slane %v4117_v15, 4  ;;  %v1030_v21 = vsel %vm736_vm2, %v4237_v46, 0  ;;  %v626_v0 = vsel %vm4088_vm7, %v621_v36, %v625_v57 }
  0xca   : > { %3244 = vmatpush3.bf16.msra.mxu1 %v1030_v21  ;;  %v2890_v40 = vcombine.low %v4047_v2, %v4050_v3  ;;  %3239 = vmatprep.mubr.msk.bf16.mxu1 %vm687_vm6, %v2872_v9  ;;  %v636_v6 = vsel %vm4088_vm7, %v631_v54, %v635_v39  ;;  %v5551_v15 = vshrl.u32 %v4112_v12, 16  ;;  %v5552_v47 = vshll.u32 %v4112_v12, 16 }
  0xcb   : > { %v1650_v14 = vsel %vm4638_vm10, %v5550_v50, %v5549_v24  ;;  %v1635_v52 = vsel %vm4638_vm10, %v1629_v35, %v1634_v5  ;;  %v2873_v26 = vcombine.low %v626_v0, %v636_v6  ;;  %v5553_v57 = vshrl.u32 %v4100_v62, 16  ;;  %v4708_v0 = vld [vmem:[%s4032_s26 + $0xc] sm:$0xf] }
  0xcc   : > { %v2971_v43 = vcombine.low %v1643_v18, %v1650_v14  ;;  %v2970_v11 = vcombine.low %v1628_v42, %v1635_v52  ;;  %v1651_v46 = vrot.slane %v5551_v15, 5  ;;  %v1652_v55 = vrot.slane %v5552_v47, 6  ;;  %v4711_v52 = vld [vmem:[%s4032_s26 + $0x10] sm:$0xf] }
  0xcd   : > { %v1655_v51 = vrot.slane %v5553_v57, 5  ;;  %v5554_v49 = vshll.u32 %v4100_v62, 16  ;;  %v1660_v2 = vshrl.u32 %v4107_v7, 16  ;;  %v5555_v41 = vshll.u32 %v4107_v7, 16  ;;  %3240 = vmatmul.mubr.msk.bf16.gmra.mrb[28].mxu1 %vm687_vm6, %v2873_v26 }
  0xce   : > { %3313 = vmatprep.mubr.msk.bf16.mxu0 %vm687_vm6, %v2970_v11  ;;  %v1653_v3 = vor.u32 %v1652_v55, %v1651_v46  ;;  %v5556_v4 = vshrl.u32 %v4138_v28, 16  ;;  %v5557_v32 = vshll.u32 %v4138_v28, 16  ;;  %v5558_v42 = vshrl.u32 %v4115_v13, 16  ;;  %3245 = vmatprep.mubr.msk.bf16.mxu1 %vm687_vm6, %v2890_v40 }
  0xcf   : > { %v1656_v53 = vrot.slane %v5554_v49, 6  ;;  %v1663_v39 = vrot.slane %v5555_v41, 6  ;;  %3314 = vmatmul.mubr.msk.bf16.vlgmr.msra.gmra.mrb[0].mxu0 %vm687_vm6, %v2971_v43  ;;  %v1662_v36 = vrot.slane %v1660_v2, 5  ;;  %v5559_v9 = vshll.u32 %v4115_v13, 16 }
  0xd0   : > { %v1666_v44 = vrot.slane %v5556_v4, 5  ;;  %v1667_v35 = vrot.slane %v5557_v32, 6  ;;  %v1670_v5 = vrot.slane %v5558_v42, 5  ;;  %v1654_v54 = vrot.slane %v1653_v3, 4 }
  0xd1   : > { %v1657_v18 = vor.u32 %v1656_v53, %v1655_v51  ;;  %v1671_v7 = vrot.slane %v5559_v9, 6  ;;  %v1675_v50 = vshrl.u32 %v4122_v19, 16  ;;  %v5560_v14 = vshll.u32 %v4122_v19, 16 }
  0xd2   : > { %v1668_v24 = vor.u32 %v1667_v35, %v1666_v44  ;;  %v2891_v43 = vcombine.low %v4708_v0, %v4711_v52  ;;  %v1664_v11 = vor.u32 %v1663_v39, %v1662_v36  ;;  %v2892_v55 = vcombine.low %v4112_v12, %v4100_v62 }
  0xd3   : > { %v1678_v21 = vrot.slane %v5560_v14, 6  ;;  %v1659_v6 = vrot.slane %v1657_v18, 4  ;;  %v1672_v15 = vor.u32 %v1671_v7, %v1670_v5  ;;  %v1658_v40 = vsel %vm4638_vm10, %v1654_v54, %v1657_v18 }
  0xd4   : > { %v1669_v46 = vrot.slane %v1668_v24, 4  ;;  %v1677_v47 = vrot.slane %v1675_v50, 5  ;;  %v5561_v57 = vshrl.u32 %v4171_v56, 16  ;;  %v5562_v49 = vshll.u32 %v4171_v56, 16 }
  0xd5   : > { %v1665_v19 = vsel %vm4638_vm10, %v1659_v6, %v1664_v11  ;;  %v1674_v26 = vrot.slane %v1672_v15, 4  ;;  %v5563_v39 = vshrl.u32 %v4177_v61, 16  ;;  %v5564_v62 = vshll.u32 %v4177_v61, 16  ;;  %3246 = vmatmul.mubr.msk.bf16.vlgmr.msra.gmra.mrb[0].mxu1 %vm687_vm6, %v2891_v43 }
  0xd6   : > { %v1681_v51 = vrot.slane %v5561_v57, 5  ;;  %v1682_v53 = vrot.slane %v5562_v49, 6  ;;  %v2972_v2 = vcombine.low %v1658_v40, %v1665_v19  ;;  %v1673_v3 = vsel %vm4638_vm10, %v1669_v46, %v1672_v15  ;;  %3249 = vmatprep.mubr.msk.bf16.mxu1 %vm687_vm6, %v2892_v55 }
  0xd7   : > { %v1679_v41 = vor.u32 %v1678_v21, %v1677_v47  ;;  %v1685_v4 = vrot.slane %v5563_v39, 5  ;;  %v1686_v12 = vrot.slane %v5564_v62, 6  ;;  %v1690_v32 = vshrl.u32 %v4180_v63, 16 }
  0xd8   : > { %v1683_v44 = vor.u32 %v1682_v53, %v1681_v51  ;;  %v5565_v35 = vshll.u32 %v4180_v63, 16  ;;  %3317 = vmatprep.mubr.msk.bf16.mxu0 %vm687_vm6, %v2972_v2  ;;  %v5566_v42 = vshrl.u32 %v4188_v10, 16  ;;  %v5567_v9 = vshll.u32 %v4188_v10, 16 }
  0xd9   : > { %v1680_v36 = vsel %vm4638_vm10, %v1674_v26, %v1679_v41  ;;  %v5568_v54 = vshrl.u32 %v4196_v23, 16  ;;  %v1687_v63 = vor.u32 %v1686_v12, %v1685_v4  ;;  %v1692_v21 = vrot.slane %v1690_v32, 5 }
  0xda   : > { %v1693_v18 = vrot.slane %v5565_v35, 6  ;;  %v1696_v5 = vrot.slane %v5566_v42, 5  ;;  %v1697_v7 = vrot.slane %v5567_v9, 6  ;;  %v2973_v50 = vcombine.low %v1673_v3, %v1680_v36 }
  0xdb   : > { %v1700_v24 = vrot.slane %v5568_v54, 5  ;;  %v1684_v14 = vrot.slane %v1683_v44, 4  ;;  %v5569_v11 = vshll.u32 %v4196_v23, 16  ;;  %v1705_v40 = vshrl.u32 %v4202_v31, 16 }
  0xdc   : > { %v1698_v6 = vor.u32 %v1697_v7, %v1696_v5  ;;  %v5570_v46 = vshll.u32 %v4202_v31, 16  ;;  %3318 = vmatmul.mubr.msk.bf16.gmra.mrb[4].mxu0 %vm687_vm6, %v2973_v50  ;;  %v2893_v43 = vcombine.low %v4138_v28, %v4115_v13  ;;  %v1689_v26 = vrot.slane %v1687_v63, 4 }
  0xdd   : > { %v1701_v15 = vrot.slane %v5569_v11, 6  ;;  %v1688_v19 = vsel %vm4638_vm10, %v1684_v14, %v1687_v63  ;;  %v1694_v57 = vor.u32 %v1693_v18, %v1692_v21  ;;  %v1707_v49 = vrot.slane %v1705_v40, 5 }
  0xde   : > { %v1708_v47 = vrot.slane %v5570_v46, 6  ;;  %v1699_v55 = vrot.slane %v1698_v6, 4  ;;  %v2894_v53 = vcombine.low %v4171_v56, %v4177_v61  ;;  %v5571_v2 = vshrl.u32 %v4251_v1, 16  ;;  %3250 = vmatmul.mubr.msk.bf16.gmra.mrb[4].mxu1 %vm687_vm6, %v2893_v43 }
  0xdf   : > { %v1702_v51 = vor.u32 %v1701_v15, %v1700_v24  ;;  %v1695_v31 = vsel %vm4638_vm10, %v1689_v26, %v1694_v57  ;;  %v5572_v41 = vshll.u32 %v4251_v1, 16  ;;  %v5573_v28 = vshrl.u32 %v4254_v59, 16 }
  0xe0   : > { %v1711_v3 = vrot.slane %v5571_v2, 5  ;;  %v2974_v4 = vcombine.low %v1688_v19, %v1695_v31  ;;  %v1709_v12 = vor.u32 %v1708_v47, %v1707_v49  ;;  %v5574_v56 = vshll.u32 %v4254_v59, 16  ;;  %3253 = vmatprep.mubr.msk.bf16.mxu1 %vm687_vm6, %v2894_v53 }
  0xe1   : > { %v1712_v13 = vrot.slane %v5572_v41, 6  ;;  %v1715_v39 = vrot.slane %v5573_v28, 5  ;;  %v1703_v44 = vsel %vm4638_vm10, %v1699_v55, %v1702_v51  ;;  %v1704_v62 = vrot.slane %v1702_v51, 4 }
  0xe2   : > { %v1716_v61 = vrot.slane %v5574_v56, 6  ;;  %v1720_v35 = vshrl.u32 %v4263_v27, 16  ;;  %v5575_v18 = vshll.u32 %v4263_v27, 16  ;;  %3321 = vmatprep.mubr.msk.bf16.mxu0 %vm687_vm6, %v2974_v4  ;;  %v5576_v5 = vshrl.u32 %v4285_v58, 16 }
  0xe3   : > { %v1713_v32 = vor.u32 %v1712_v13, %v1711_v3  ;;  %v1710_v42 = vsel %vm4638_vm10, %v1704_v62, %v1709_v12  ;;  %v5577_v7 = vshll.u32 %v4285_v58, 16  ;;  %v5578_v24 = vshrl.u32 %v4272_v48, 16  ;;  %v5585_v62 = vld [vmem:[#allocation11_spill] sm:$0xff] }
  0xe4   : > { %v1723_v36 = vrot.slane %v5575_v18, 6  ;;  %v1726_v9 = vrot.slane %v5576_v5, 5  ;;  %v2975_v14 = vcombine.low %v1703_v44, %v1710_v42  ;;  %v1717_v27 = vor.u32 %v1716_v61, %v1715_v39 }
  0xe5   : > { %v1727_v54 = vrot.slane %v5577_v7, 6  ;;  %v1730_v50 = vrot.slane %v5578_v24, 5  ;;  %v1714_v63 = vrot.slane %v1713_v32, 4  ;;  %v1722_v21 = vrot.slane %v1720_v35, 5  ;;  %v5587_v35 = vld [vmem:[#allocation12_spill] sm:$0xff] }
  0xe6   : > { %v5579_v11 = vshll.u32 %v4272_v48, 16  ;;  %v1735_v40 = vshrl.u32 %v4281_v45, 16  ;;  %v5580_v46 = vshll.u32 %v4281_v45, 16  ;;  %3322 = vmatmul.mubr.msk.bf16.gmra.mrb[8].mxu0 %vm687_vm6, %v2975_v14  ;;  %v2895_v43 = vcombine.low %v4188_v10, %v4196_v23 }
  0xe7   : > { %v1728_v6 = vor.u32 %v1727_v54, %v1726_v9  ;;  %v1718_v19 = vsel %vm4638_vm10, %v1714_v63, %v1717_v27  ;;  %v1719_v26 = vrot.slane %v1717_v27, 4  ;;  %v1724_v57 = vor.u32 %v1723_v36, %v1722_v21  ;;  %v5590_v9 = vld [vmem:[#allocation13_spill] sm:$0xff] }
  0xe8   : > { %v1731_v15 = vrot.slane %v5579_v11, 6  ;;  %v1738_v47 = vrot.slane %v5580_v46, 6  ;;  %v1737_v49 = vrot.slane %v1735_v40, 5  ;;  %v2896_v53 = vcombine.low %v4251_v1, %v4254_v59  ;;  %3254 = vmatmul.mubr.msk.bf16.gmra.mrb[8].mxu1 %vm687_vm6, %v2895_v43  ;;  %v5593_v11 = vld [vmem:[#allocation14_spill] sm:$0xff] }
  0xe9   : > { %v1729_v55 = vrot.slane %v1728_v6, 4  ;;  %v1725_v45 = vsel %vm4638_vm10, %v1719_v26, %v1724_v57  ;;  %v5581_v31 = vshrl.u32 %v4321_v16, 16  ;;  %v5582_v3 = vshll.u32 %v4321_v16, 16  ;;  %v5595_v26 = vld [vmem:[#allocation15_spill] sm:$0xff] }
  0xea   : > { %v1732_v51 = vor.u32 %v1731_v15, %v1730_v50  ;;  %v5583_v23 = vshrl.u32 %v4324_v37, 16  ;;  %v2976_v13 = vcombine.low %v1718_v19, %v1725_v45  ;;  %v1739_v4 = vor.u32 %v1738_v47, %v1737_v49  ;;  %3257 = vmatprep.mubr.msk.bf16.mxu1 %vm687_vm6, %v2896_v53 }
  0xeb   : > { %v1741_v2 = vrot.slane %v5581_v31, 5  ;;  %v1742_v10 = vrot.slane %v5582_v3, 6  ;;  %v5584_v1 = vshll.u32 %v4324_v37, 16  ;;  %v1750_v12 = vshrl.u32 %v5585_v62, 16 }
  0xec   : > { %v1745_v41 = vrot.slane %v5583_v23, 5  ;;  %v1733_v28 = vsel %vm4638_vm10, %v1729_v55, %v1732_v51  ;;  %v1734_v39 = vrot.slane %v1732_v51, 4  ;;  %v5586_v32 = vshll.u32 %v5585_v62, 16  ;;  %3325 = vmatprep.mubr.msk.bf16.mxu0 %vm687_vm6, %v2976_v13 }
  0xed   : > { %v1743_v44 = vor.u32 %v1742_v10, %v1741_v2  ;;  %v1746_v59 = vrot.slane %v5584_v1, 6  ;;  %v5588_v18 = vshrl.u32 %v5587_v35, 16  ;;  %v5589_v42 = vshll.u32 %v5587_v35, 16  ;;  %v5596_v2 = vld [vmem:[#allocation17_spill] sm:$0xff] }
  0xee   : > { %v1753_v56 = vrot.slane %v5586_v32, 6  ;;  %v1740_v61 = vsel %vm4638_vm10, %v1734_v39, %v1739_v4  ;;  %v5591_v7 = vshrl.u32 %v5590_v9, 16  ;;  %v1752_v63 = vrot.slane %v1750_v12, 5  ;;  %v5599_v4 = vld [vmem:[#allocation16_spill] sm:$0xff] }
  0xef   : > { %v1756_v36 = vrot.slane %v5588_v18, 5  ;;  %v1757_v5 = vrot.slane %v5589_v42, 6  ;;  %v2977_v24 = vcombine.low %v1733_v28, %v1740_v61  ;;  %v1744_v50 = vrot.slane %v1743_v44, 4  ;;  %v5604_v61 = vld [vmem:[#allocation21_spill] sm:$0xff] }
  0xf0   : > { %v1760_v54 = vrot.slane %v5591_v7, 5  ;;  %v1747_v14 = vor.u32 %v1746_v59, %v1745_v41  ;;  %v5592_v21 = vshll.u32 %v5590_v9, 16  ;;  %v1765_v15 = vshrl.u32 %v5593_v11, 16 }
  0xf1   : > { %v1758_v27 = vor.u32 %v1757_v5, %v1756_v36  ;;  %v5594_v40 = vshll.u32 %v5593_v11, 16  ;;  %3326 = vmatmul.mubr.msk.bf16.gmra.mrb[12].mxu0 %vm687_vm6, %v2977_v24  ;;  %v1754_v19 = vor.u32 %v1753_v56, %v1752_v63  ;;  %v2369_v57 = vsel %vm736_vm2, %v5595_v26, 0  ;;  %v5607_v63 = vld [vmem:[#allocation19_spill] sm:$0xff] }
  0xf2   : > { %v1761_v6 = vrot.slane %v5592_v21, 6  ;;  %v1748_v47 = vsel %vm4638_vm10, %v1744_v50, %v1747_v14  ;;  %v1749_v43 = vrot.slane %v1747_v14, 4  ;;  %v2897_v55 = vcombine.low %v4285_v58, %v4272_v48  ;;  %3346 = vmatpush3.bf16.msra.mxu0 %v2369_v57 }
  0xf3   : > { %v1768_v46 = vrot.slane %v5594_v40, 6  ;;  %v1759_v51 = vrot.slane %v1758_v27, 4  ;;  %v1767_v53 = vrot.slane %v1765_v15, 5  ;;  %v2898_v31 = vcombine.low %v4321_v16, %v4324_v37  ;;  %v5602_v16 = vld [vmem:[#allocation18_spill] sm:$0xff]  ;;  %v5610_v15 = vld [vmem:[#allocation20_spill] sm:$0xff] }
  0xf4   : > { %v1762_v49 = vor.u32 %v1761_v6, %v1760_v54  ;;  %v1755_v45 = vsel %vm4638_vm10, %v1749_v43, %v1754_v19  ;;  %v5597_v3 = vshrl.u32 %v5596_v2, 16  ;;  %v5598_v23 = vshll.u32 %v5596_v2, 16  ;;  %3258 = vmatmul.mubr.msk.bf16.gmra.mrb[12].mxu1 %vm687_vm6, %v2897_v55 }
  0xf5   : > { %v2978_v13 = vcombine.low %v1748_v47, %v1755_v45  ;;  %v1769_v28 = vor.u32 %v1768_v46, %v1767_v53  ;;  %v5600_v44 = vshrl.u32 %v5599_v4, 16  ;;  %v5601_v59 = vshll.u32 %v5599_v4, 16  ;;  %3261 = vmatprep.mubr.msk.bf16.mxu1 %vm687_vm6, %v2898_v31  ;;  %v5612_v31 = vld [vmem:[#allocation22_spill] sm:$0xff] }
  0xf6   : > { %v1771_v10 = vrot.slane %v5597_v3, 5  ;;  %v1772_v41 = vrot.slane %v5598_v23, 6  ;;  %v1763_v58 = vsel %vm4638_vm10, %v1759_v51, %v1762_v49  ;;  %v1764_v48 = vrot.slane %v1762_v49, 4 }
  0xf7   : > { %v1775_v1 = vrot.slane %v5600_v44, 5  ;;  %v1776_v62 = vrot.slane %v5601_v59, 6  ;;  %v1780_v37 = vshrl.u32 %v5602_v16, 16  ;;  %3329 = vmatprep.mubr.msk.bf16.mxu0 %vm687_vm6, %v2978_v13  ;;  %v5603_v32 = vshll.u32 %v5602_v16, 16 }
  0xf8   : > { %v1773_v39 = vor.u32 %v1772_v41, %v1771_v10  ;;  %v1770_v12 = vsel %vm4638_vm10, %v1764_v48, %v1769_v28  ;;  %v5605_v18 = vshrl.u32 %v5604_v61, 16  ;;  %v5606_v42 = vshll.u32 %v5604_v61, 16  ;;  %v5615_v28 = vld [vmem:[#allocation23_spill] sm:$0xff] }
  0xf9   : > { %v1783_v56 = vrot.slane %v5603_v32, 6  ;;  %v2979_v7 = vcombine.low %v1763_v58, %v1770_v12  ;;  %v1777_v24 = vor.u32 %v1776_v62, %v1775_v1  ;;  %v1782_v50 = vrot.slane %v1780_v37, 5  ;;  %v5620_v12 = vld [vmem:[#allocation25_spill] sm:$0xff] }
  0xfa   : > { %v1786_v36 = vrot.slane %v5605_v18, 5  ;;  %v1787_v5 = vrot.slane %v5606_v42, 6  ;;  %v1774_v54 = vrot.slane %v1773_v39, 4  ;;  %v5608_v27 = vshrl.u32 %v5607_v63, 16 }
  0xfb   : > { %v5609_v6 = vshll.u32 %v5607_v63, 16  ;;  %v1795_v40 = vshrl.u32 %v5610_v15, 16  ;;  %3330 = vmatmul.mubr.msk.bf16.gmra.mrb[16].mxu0 %vm687_vm6, %v2979_v7  ;;  %v1779_v47 = vrot.slane %v1777_v24, 4  ;;  %v1784_v43 = vor.u32 %v1783_v56, %v1782_v50  ;;  %v5623_v50 = vld [vmem:[#allocation26_spill] sm:$0xff] }
  0xfc   : > { %v1788_v14 = vor.u32 %v1787_v5, %v1786_v36  ;;  %v1790_v21 = vrot.slane %v5608_v27, 5  ;;  %v1778_v46 = vsel %vm4638_vm10, %v1774_v54, %v1777_v24  ;;  %v5611_v19 = vshll.u32 %v5610_v15, 16 }
  0xfd   : > { %v1791_v11 = vrot.slane %v5609_v6, 6  ;;  %v2899_v57 = vcombine.low %v5587_v35, %v5590_v9  ;;  %v1797_v49 = vrot.slane %v1795_v40, 5  ;;  %v1785_v53 = vsel %vm4638_vm10, %v1779_v47, %v1784_v43 }
  0xfe   : > { %v1798_v26 = vrot.slane %v5611_v19, 6  ;;  %v1789_v55 = vrot.slane %v1788_v14, 4  ;;  %v2900_v45 = vcombine.low %v5596_v2, %v5599_v4  ;;  %v5613_v3 = vshrl.u32 %v5612_v31, 16  ;;  %v5618_v2 = vld [vmem:[#allocation24_spill] sm:$0xff] }
  0xff   : > { %v1792_v51 = vor.u32 %v1791_v11, %v1790_v21  ;;  %v5614_v23 = vshll.u32 %v5612_v31, 16  ;;  %v2980_v13 = vcombine.low %v1778_v46, %v1785_v53  ;;  %v5616_v39 = vshrl.u32 %v5615_v28, 16  ;;  %3262 = vmatmul.mubr.msk.bf16.gmra.mrb[16].mxu1 %vm687_vm6, %v2899_v57  ;;  %v5626_v11 = vld [vmem:[#allocation27_spill] sm:$0xff] }
 0x100   : > { %v1801_v10 = vrot.slane %v5613_v3, 5  ;;  %v1799_v9 = vor.u32 %v1798_v26, %v1797_v49  ;;  %v5617_v1 = vshll.u32 %v5615_v28, 16  ;;  %v1810_v4 = vshrl.u32 %v5618_v2, 16  ;;  %3265 = vmatprep.mubr.msk.bf16.mxu1 %vm687_vm6, %v2900_v45 }
 0x101   : > { %v1802_v41 = vrot.slane %v5614_v23, 6  ;;  %v1793_v58 = vsel %vm4638_vm10, %v1789_v55, %v1792_v51  ;;  %v1794_v35 = vrot.slane %v1792_v51, 4  ;;  %v1805_v44 = vrot.slane %v5616_v39, 5  ;;  %3333 = vmatprep.mubr.msk.bf16.mxu0 %vm687_vm6, %v2980_v13 }
 0x102   : > { %v1806_v59 = vrot.slane %v5617_v1, 6  ;;  %v5619_v16 = vshll.u32 %v5618_v2, 16  ;;  %v5621_v32 = vshrl.u32 %v5620_v12, 16  ;;  %v5622_v18 = vshll.u32 %v5620_v12, 16 }
 0x103   : > { %v1803_v48 = vor.u32 %v1802_v41, %v1801_v10  ;;  %v1800_v62 = vsel %vm4638_vm10, %v1794_v35, %v1799_v9  ;;  %v1812_v54 = vrot.slane %v1810_v4, 5  ;;  %v5624_v14 = vshrl.u32 %v5623_v50, 16 }
 0x104   : > { %v1813_v37 = vrot.slane %v5619_v16, 6  ;;  %v1816_v56 = vrot.slane %v5621_v32, 5  ;;  %v1817_v36 = vrot.slane %v5622_v18, 6  ;;  %v2981_v42 = vcombine.low %v1793_v58, %v1800_v62 }
 0x105   : > { %v1804_v5 = vrot.slane %v1803_v48, 4  ;;  %v1807_v7 = vor.u32 %v1806_v59, %v1805_v44  ;;  %v1820_v27 = vrot.slane %v5624_v14, 5  ;;  %v5625_v21 = vshll.u32 %v5623_v50, 16 }
 0x106   : > { %v1818_v24 = vor.u32 %v1817_v36, %v1816_v56  ;;  %v1825_v15 = vshrl.u32 %v5626_v11, 16  ;;  %3334 = vmatmul.mubr.msk.bf16.gmra.mrb[20].mxu0 %vm687_vm6, %v2981_v42  ;;  %v1814_v47 = vor.u32 %v1813_v37, %v1812_v54  ;;  %v5627_v43 = vshll.u32 %v5626_v11, 16 }
 0x107   : > { %v1821_v6 = vrot.slane %v5625_v21, 6  ;;  %v1808_v40 = vsel %vm4638_vm10, %v1804_v5, %v1807_v7  ;;  %v1809_v46 = vrot.slane %v1807_v7, 4  ;;  %v2901_v26 = vcombine.low %v5604_v61, %v5607_v63 }
 0x108   : > { %v1828_v19 = vrot.slane %v5627_v43, 6  ;;  %v1819_v57 = vrot.slane %v1818_v24, 4  ;;  %v1827_v51 = vrot.slane %v1825_v15, 5  ;;  %v2902_v53 = vcombine.low %v5612_v31, %v5615_v28 }
 0x109   : > { %v1822_v55 = vor.u32 %v1821_v6, %v1820_v27  ;;  %v1815_v49 = vsel %vm4638_vm10, %v1809_v46, %v1814_v47  ;;  %v1831_v45 = vrot.slane %v590_v29, 5  ;;  %v1832_v3 = vrot.slane %v593_v30, 6  ;;  %3266 = vmatmul.mubr.msk.bf16.gmra.mrb[20].mxu1 %vm687_vm6, %v2901_v26  ;;  %v3677_v47 = vld [vmem:[%s4032_s26 + $0x4] sm:$0xf] }
 0x10a   : > { %v2982_v10 = vcombine.low %v1808_v40, %v1815_v49  ;;  %v1829_v63 = vor.u32 %v1828_v19, %v1827_v51  ;;  %v1835_v13 = vrot.slane %v603_v22, 5  ;;  %v5628_v58 = vshll.u32 %v4550_v38, 16  ;;  %3269 = vmatprep.mubr.msk.bf16.mxu1 %vm687_vm6, %v2902_v53  ;;  %v3676_v40 = vld [vmem:[%s4032_s26] sm:$0xf] }
 0x10b   : > { %v1823_v23 = vsel %vm4638_vm10, %v1819_v57, %v1822_v55  ;;  %v1824_v61 = vrot.slane %v1822_v55, 4  ;;  %v1833_v41 = vor.u32 %v1832_v3, %v1831_v45  ;;  %v1840_v31 = vshrl.u32 %v4560_v17, 16  ;;  %v3678_v55 = vld [vmem:[%s4032_s26 + $0x14] sm:$0x3]  ;;  %v3679_v45 = vld [vmem:[%s4032_s26 + $0x8] sm:$0x3] }
 0x10c   : > { %v1836_v35 = vrot.slane %v5628_v58, 6  ;;  %3337 = vmatprep.mubr.msk.bf16.mxu0 %vm687_vm6, %v2982_v10  ;;  %v5629_v30 = vshll.u32 %v4560_v17, 16  ;;  %v5630_v48 = vshrl.u32 %v4568_v34, 16  ;;  %v5631_v44 = vshll.u32 %v4568_v34, 16 }
 0x10d   : > { %v1830_v29 = vsel %vm4638_vm10, %v1824_v61, %v1829_v63  ;;  %v1834_v59 = vrot.slane %v1833_v41, 4  ;;  %v1842_v62 = vrot.slane %v1840_v31, 5  ;;  %v1850_v37 = vrot.slane %v627_v33, 5  ;;  %v3680_v63 = vld [vmem:[%s4032_s26 + $0x1c] sm:$0xf] }
 0x10e   : > { %v1843_v9 = vrot.slane %v5629_v30, 6  ;;  %v1846_v39 = vrot.slane %v5630_v48, 5  ;;  %v1847_v1 = vrot.slane %v5631_v44, 6  ;;  %v2983_v22 = vcombine.low %v1823_v23, %v1830_v29  ;;  %v3682_v29 = vld [vmem:[%s4032_s26 + $0x20] sm:$0x3] }
 0x10f   : > { %v1837_v4 = vor.u32 %v1836_v35, %v1835_v13  ;;  %v5632_v32 = vshll.u32 %v4576_v25, 16  ;;  %v1855_v18 = vshrl.u32 %v4584_v60, 16  ;;  %v5633_v7 = vshll.u32 %v4584_v60, 16  ;;  %v3681_v35 = vld [vmem:[%s4032_s26 + $0x18] sm:$0xf] }
 0x110   : > { %v1848_v16 = vor.u32 %v1847_v1, %v1846_v39  ;;  %3338 = vmatmul.mubr.msk.bf16.gmra.mrb[24].mxu0 %vm687_vm6, %v2983_v22  ;;  %v1844_v5 = vor.u32 %v1843_v9, %v1842_v62  ;;  %v2903_v24 = vcombine.low %v5620_v12, %v5623_v50  ;;  %v2904_v15 = vcombine.low %v4547_v8, %v4550_v38  ;;  %v3683_v39 = vld [vmem:[%s4032_s26 + $0x28] sm:$0xf] }
 0x111   : > { %v1851_v56 = vrot.slane %v5632_v32, 6  ;;  %v1838_v36 = vsel %vm4638_vm10, %v1834_v59, %v1837_v4  ;;  %v1839_v42 = vrot.slane %v1837_v4, 4  ;;  %v1858_v54 = vrot.slane %v5633_v7, 6  ;;  %v3684_v4 = vld [vmem:[%s4032_s26 + $0x34] sm:$0xf] }
 0x112   : > { %v1849_v14 = vrot.slane %v1848_v16, 4  ;;  %v1857_v21 = vrot.slane %v1855_v18, 5  ;;  %v3002_v46 = vrot.slane %v3676_v40, 10  ;;  %v2160_v43 = vrot.slane %v3677_v47, 6  ;;  %3270 = vmatmul.mubr.msk.bf16.gmra.mrb[24].mxu1 %vm687_vm6, %v2903_v24  ;;  %v3685_v32 = vld [vmem:[%s4032_s26 + $0x24] sm:$0xf] }
 0x113   : > { %v1852_v27 = vor.u32 %v1851_v56, %v1850_v37  ;;  %v1845_v6 = vsel %vm4638_vm10, %v1839_v42, %v1844_v5  ;;  %v2170_v51 = vrot.slane %v3678_v55, 6  ;;  %v2163_v3 = vrot.slane %v3679_v45, 6  ;;  %3273 = vmatprep.mubr.msk.bf16.mxu1 %vm687_vm6, %v2904_v15  ;;  %v3687_v5 = vld [vmem:[%s4032_s26 + $0x30] sm:$0xf]  ;;  %v3688_v24 = vld [vmem:[%s4032_s26 + $0x38] sm:$0x3] }
 0x114   : > { %v2984_v19 = vcombine.low %v1838_v36, %v1845_v6  ;;  %v1859_v57 = vor.u32 %v1858_v54, %v1857_v21  ;;  %v2161_v49 = vsel %vm4947_vm12, %v3002_v46, %v2160_v43  ;;  %v2162_v53 = vrot.slane %v2160_v43, 4  ;;  %v3686_v36 = vld [vmem:[%s4032_s26 + $0x2c] sm:$0x3]  ;;  %v3689_v6 = vld [vmem:[%s4032_s26 + $0x40] sm:$0xf] }
 0x115   : > { %v1853_v26 = vsel %vm4638_vm10, %v1849_v14, %v1852_v27  ;;  %v1854_v12 = vrot.slane %v1852_v27, 4  ;;  %v3003_v23 = vrot.slane %v4708_v0, 10  ;;  %v2167_v61 = vrot.slane %v4711_v52, 6  ;;  %v3690_v47 = vld [vmem:[%s4032_s26 + $0x4c] sm:$0xf] }
 0x116   : > { %3341 = vmatprep.mubr.msk.bf16.mxu0 %vm687_vm6, %v2984_v19  ;;  %v2174_v41 = vrot.slane %v3680_v63, 6  ;;  %v2164_v58 = vsel %vm4947_vm12, %v2162_v53, %v2163_v3  ;;  %v3004_v31 = vrot.slane %v3681_v35, 10  ;;  %v2177_v30 = vrot.slane %v3682_v29, 6  ;;  %v3693_v53 = vld [vmem:[%s4032_s26 + $0x48] sm:$0xf] }
 0x117   : > { %v1860_v10 = vsel %vm4638_vm10, %v1854_v12, %v1859_v57  ;;  %v3018_v20 = vcombine.low %v2161_v49, %v2164_v58  ;;  %v2169_v0 = vrot.slane %v2167_v61, 4  ;;  %v2168_v9 = vsel %vm4947_vm12, %v3003_v23, %v2167_v61  ;;  %v3691_v12 = vld [vmem:[%s4032_s26 + $0x3c] sm:$0xf] }
 0x118   : > { %v2985_v13 = vcombine.low %v1853_v26, %v1860_v10  ;;  %v2176_v52 = vrot.slane %v2174_v41, 4  ;;  %v2181_v44 = vrot.slane %v3683_v39, 6  ;;  %v2905_v1 = vcombine.low %v4568_v34, %v4576_v25  ;;  %v3694_v10 = vld [vmem:[%s4032_s26 + $0x50] sm:$0x3] }
 0x119   : > { %v2171_v48 = vsel %vm4947_vm12, %v2169_v0, %v2170_v51  ;;  %v2175_v22 = vsel %vm4947_vm12, %v3004_v31, %v2174_v41  ;;  %v2188_v62 = vrot.slane %v3684_v4, 6  ;;  %v3005_v56 = vrot.slane %v3685_v32, 10  ;;  %v3692_v51 = vld [vmem:[%s4032_s26 + $0x44] sm:$0x3]  ;;  %v3695_v41 = vld [vmem:[%s4032_s26 + $0x58] sm:$0xf] }
 0x11a   : > { %3342 = vmatmul.mubr.msk.bf16.gmra.mrb[28].mxu0 %vm687_vm6, %v2985_v13  ;;  %v2178_v59 = vsel %vm4947_vm12, %v2176_v52, %v2177_v30  ;;  %v3019_v16 = vcombine.low %v2168_v9, %v2171_v48  ;;  %v2183_v18 = vrot.slane %v2181_v44, 4  ;;  %v2184_v42 = vrot.slane %v3686_v36, 6  ;;  %3274 = vmatmul.mubr.msk.bf16.gmra.mrb[28].mxu1 %vm687_vm6, %v2905_v1  ;;  %v3696_v31 = vld [vmem:[%s4032_s26 + $0x64] sm:$0xf]  ;;  %v3697_v0 = vld [vmem:[%s4032_s26 + $0x54] sm:$0xf] }
 0x11b   : > { %3347 = vmatprep.mubr.msk.bf16.mxu0 %vm687_vm6, %v3018_v20  ;;  %v3020_v37 = vcombine.low %v2175_v22, %v2178_v59  ;;  %v3006_v7 = vrot.slane %v3687_v5, 10  ;;  %v2190_v54 = vrot.slane %v2188_v62, 4  ;;  %v2191_v14 = vrot.slane %v3688_v24, 6  ;;  %v3698_v48 = vld [vmem:[%s4032_s26 + $0x5c] sm:$0x3] }
 0x11c   : > { %v2182_v27 = vsel %vm4947_vm12, %v3005_v56, %v2181_v44  ;;  %v2185_v21 = vsel %vm4947_vm12, %v2183_v18, %v2184_v42  ;;  %v2195_v15 = vrot.slane %v3689_v6, 6  ;;  %v2202_v43 = vrot.slane %v3690_v47, 6  ;;  %v3699_v44 = vld [vmem:[%s4032_s26 + $0x60] sm:$0xf]  ;;  %v3700_v59 = vld [vmem:[%s4032_s26 + $0x68] sm:$0x3] }
 0x11d   : > { %v2189_v40 = vsel %vm4947_vm12, %v3006_v7, %v2188_v62  ;;  %v2192_v46 = vsel %vm4947_vm12, %v2190_v54, %v2191_v14  ;;  %v3021_v19 = vcombine.low %v2182_v27, %v2185_v21  ;;  %v3007_v57 = vrot.slane %v3691_v12, 10  ;;  %v3702_v36 = vld [vmem:[%s4032_s26 + $0x7c] sm:$0xf]  ;;  %v3703_v54 = vld [vmem:[%s4032_s26 + $0x6c] sm:$0xf] }
 0x11e   : > { %v3022_v26 = vcombine.low %v2189_v40, %v2192_v46  ;;  %v2197_v55 = vrot.slane %v2195_v15, 4  ;;  %v2198_v49 = vrot.slane %v3692_v51, 6  ;;  %v3008_v45 = vrot.slane %v3693_v53, 10  ;;  %v3704_v27 = vld [vmem:[%s4032_s26 + $0x74] sm:$0x3] }
 0x11f   : > { %v2204_v3 = vrot.slane %v2202_v43, 4  ;;  %v2205_v23 = vrot.slane %v3694_v10, 6  ;;  %v2196_v61 = vsel %vm4947_vm12, %v3007_v57, %v2195_v15  ;;  %v2209_v13 = vrot.slane %v3695_v41, 6  ;;  %v3705_v6 = vld [vmem:[%s4032_s26 + $0x78] sm:$0xf] }
 0x120   : > { %v2199_v63 = vsel %vm4947_vm12, %v2197_v55, %v2198_v49  ;;  %v2203_v58 = vsel %vm4947_vm12, %v3008_v45, %v2202_v43  ;;  %v2216_v29 = vrot.slane %v3696_v31, 6  ;;  %v3009_v52 = vrot.slane %v3697_v0, 10  ;;  %v3706_v46 = vld [vmem:[%s4032_s26 + $0x80] sm:$0x3]  ;;  %v3708_v45 = vld [vmem:[%s4032_s26 + $0x84] sm:$0xf] }
 0x121   : > { %v2206_v35 = vsel %vm4947_vm12, %v2204_v3, %v2205_v23  ;;  %v3023_v30 = vcombine.low %v2196_v61, %v2199_v63  ;;  %v2211_v9 = vrot.slane %v2209_v13, 4  ;;  %v2212_v39 = vrot.slane %v3698_v48, 6  ;;  %v3709_v23 = vld [vmem:[%s4032_s26 + $0x8c] sm:$0x3]  ;;  %v3710_v63 = vld [vmem:[%s4032_s26 + $0x90] sm:$0xf] }
 0x122   : > { %3348 = vmatmul.mubr.msk.bf16.vlgmr.msra.gmra.mrb[0].mxu0 %vm687_vm6, %v3019_v16  ;;  %v3024_v20 = vcombine.low %v2203_v58, %v2206_v35  ;;  %v3010_v1 = vrot.slane %v3699_v44, 10  ;;  %v2218_v22 = vrot.slane %v2216_v29, 4  ;;  %v2219_v4 = vrot.slane %v3700_v59, 6 }
 0x123   : > { %3351 = vmatprep.mubr.msk.bf16.mxu0 %vm687_vm6, %v3020_v37  ;;  %v2210_v62 = vsel %vm4947_vm12, %v3009_v52, %v2209_v13  ;;  %v2213_v16 = vsel %vm4947_vm12, %v2211_v9, %v2212_v39  ;;  %v3701_v37 = vld [vmem:[%s4032_s26 + $0x70] sm:$0xf]  ;;  %v2230_v42 = vrot.slane %v3702_v36, 6  ;;  %v3011_v24 = vrot.slane %v3703_v54, 10  ;;  %v3711_v52 = vld [vmem:[%s4032_s26 + $0x9c] sm:$0xf] }
 0x124   : > { %v2223_v32 = vrot.slane %v3701_v37, 6  ;;  %v2217_v56 = vsel %vm4947_vm12, %v3010_v1, %v2216_v29  ;;  %v2220_v18 = vsel %vm4947_vm12, %v2218_v22, %v2219_v4  ;;  %v3025_v5 = vcombine.low %v2210_v62, %v2213_v16 }
 0x125   : > { %v3026_v7 = vcombine.low %v2217_v56, %v2220_v18  ;;  %v2226_v21 = vrot.slane %v3704_v27, 6  ;;  %v3012_v15 = vrot.slane %v3705_v6, 10  ;;  %v2232_v40 = vrot.slane %v2230_v42, 4 }
 0x126   : > { %v2225_v14 = vrot.slane %v2223_v32, 4  ;;  %v2233_v47 = vrot.slane %v3706_v46, 6  ;;  %v2224_v43 = vsel %vm4947_vm12, %v3011_v24, %v2223_v32  ;;  %v2244_v51 = vrot.slane %v5615_v28, 6 }
 0x127   : > { %v2231_v57 = vsel %vm4947_vm12, %v3012_v15, %v2230_v42  ;;  %v3013_v3 = vrot.slane %v3708_v45, 10  ;;  %v2240_v61 = vrot.slane %v3709_v23, 6  ;;  %v3014_v41 = vrot.slane %v3710_v63, 10 }
 0x128   : > { %v2234_v55 = vsel %vm4947_vm12, %v2232_v40, %v2233_v47  ;;  %v2246_v13 = vrot.slane %v2244_v51, 4  ;;  %v2247_v58 = vrot.slane %v5618_v2, 6  ;;  %v2251_v31 = vrot.slane %v5623_v50, 6 }
 0x129   : > { %v3028_v53 = vcombine.low %v2231_v57, %v2234_v55  ;;  %v2245_v29 = vsel %vm4947_vm12, %v3014_v41, %v2244_v51  ;;  %v2258_v2 = vrot.slane %v4550_v38, 6  ;;  %v3015_v9 = vrot.slane %v3711_v52, 10 }
 0x12a   : > { %3352 = vmatmul.mubr.msk.bf16.gmra.mrb[4].mxu0 %vm687_vm6, %v3021_v19  ;;  %v2227_v19 = vsel %vm4947_vm12, %v2225_v14, %v2226_v21  ;;  %v2253_v48 = vrot.slane %v2251_v31, 4  ;;  %v2254_v39 = vrot.slane %v5626_v11, 6  ;;  %v3016_v44 = vrot.slane %v4547_v8, 10 }
 0x12b   : > { %3355 = vmatprep.mubr.msk.bf16.mxu0 %vm687_vm6, %v3022_v26  ;;  %v3707_v26 = vld [vmem:[%s4032_s26 + $0x88] sm:$0xf]  ;;  %v3027_v49 = vcombine.low %v2224_v43, %v2227_v19  ;;  %v2260_v1 = vrot.slane %v2258_v2, 4  ;;  %v2261_v50 = vrot.slane %v4560_v17, 6  ;;  %v2252_v22 = vsel %vm4947_vm12, %v3015_v9, %v2251_v31 }
 0x12c   : > { %v2237_v12 = vrot.slane %v3707_v26, 6  ;;  %v2255_v38 = vsel %vm4947_vm12, %v2253_v48, %v2254_v39  ;;  %v2265_v59 = vrot.slane %v4576_v25, 6  ;;  %v2259_v11 = vsel %vm4947_vm12, %v3016_v44, %v2258_v2 }
 0x12d   : > { %v2262_v8 = vsel %vm4947_vm12, %v2260_v1, %v2261_v50  ;;  %v3031_v4 = vcombine.low %v2252_v22, %v2255_v38  ;;  %v3017_v62 = vrot.slane %v4568_v34, 10  ;;  %v2268_v37 = vrot.slane %v4584_v60, 6 }
 0x12e   : > { %v2239_v10 = vrot.slane %v2237_v12, 4  ;;  %v2238_v28 = vsel %vm4947_vm12, %v3013_v3, %v2237_v12  ;;  %v3032_v17 = vcombine.low %v2259_v11, %v2262_v8  ;;  %v2267_v16 = vrot.slane %v2265_v59, 4 }
 0x12f   : > { %v2266_v25 = vsel %vm4947_vm12, %v3017_v62, %v2265_v59  ;;  %v5511_v42 = vmov 1.0   ;;  %vm2740_vm13 = vcmask 1040384  }
 0x130   : > { %v2241_v35 = vsel %vm4947_vm12, %v2239_v10, %v2240_v61  ;;  %v2269_v32 = vsel %vm4947_vm12, %v2267_v16, %v2268_v37  ;;  %2628 = vmatprep.mubr.f32.mxu1 %v5511_v42 }
 0x131   : > { %v3033_v56 = vcombine.low %v2266_v25, %v2269_v32 }
 0x132   : > { %3356 = vmatmul.mubr.msk.bf16.gmra.mrb[8].mxu0 %vm687_vm6, %v3023_v30  ;;  %v2248_v30 = vsel %vm4947_vm12, %v2246_v13, %v2247_v58 }
 0x133   : > { %3359 = vmatprep.mubr.msk.bf16.mxu0 %vm687_vm6, %v3024_v20  ;;  %v3029_v20 = vcombine.low %v2238_v28, %v2241_v35  ;;  %v3030_v0 = vcombine.low %v2245_v29, %v2248_v30 }
 0x13a   : > { %3360 = vmatmul.mubr.msk.bf16.gmra.mrb[12].mxu0 %vm687_vm6, %v3025_v5 }
 0x13b   : > { %3363 = vmatprep.mubr.msk.bf16.mxu0 %vm687_vm6, %v3026_v7 }
 0x142   : > { %3364 = vmatmul.mubr.msk.bf16.gmra.mrb[16].mxu0 %vm687_vm6, %v3027_v49 }
 0x143   : > { %3367 = vmatprep.mubr.msk.bf16.mxu0 %vm687_vm6, %v3028_v53 }
 0x14a   : > { %3368 = vmatmul.mubr.msk.bf16.gmra.mrb[20].mxu0 %vm687_vm6, %v3029_v20 }
 0x14b   : > { %3371 = vmatprep.mubr.msk.bf16.mxu0 %vm687_vm6, %v3030_v0 }
 0x152   : > { %3372 = vmatmul.mubr.msk.bf16.gmra.mrb[24].mxu0 %vm687_vm6, %v3031_v4 }
 0x153   : > { %3375 = vmatprep.mubr.msk.bf16.mxu0 %vm687_vm6, %v3032_v17 }
 0x15a   : > { %3376 = vmatmul.mubr.msk.bf16.gmra.mrb[28].mxu0 %vm687_vm6, %v3033_v56 }
 0x1a8   : > { %v3247_v18 = vpop.f32.mrb[0].mxu1 }
 0x1a9   : > { %v1066_v36 = vpop.f32.mrb[1].mxu1 }
 0x1aa   : > { %v3248_v34 = vpop.f32.mrb[2].mxu1 }
 0x1ab   : > { %v1069_v60 = vpop.f32.mrb[3].mxu1 }
 0x1b1   : > { %v3251_v5 = vpop.f32.mrb[4].mxu1 }
 0x1b2   : > { %v1082_v7 = vpop.f32.mrb[5].mxu1 }
 0x1b3   : > { %v3252_v54 = vpop.f32.mrb[6].mxu1 }
 0x1b4   : > { %v1085_v24 = vpop.f32.mrb[7].mxu1 }
 0x1bb   : > { %v3255_v14 = vpop.f32.mrb[8].mxu1 }
 0x1bc   : > { %v1098_v27 = vpop.f32.mrb[9].mxu1 }
 0x1bd   : > { %v3256_v21 = vpop.f32.mrb[10].mxu1 }
 0x1be   : > { %v1101_v6 = vpop.f32.mrb[11].mxu1 }
 0x1c7   : > { %v5097_v33 = vpop.f32.mrb[12].mxu1 }
 0x1c8   : > { %v5099_v15 = vpop.f32.mrb[13].mxu1 }
 0x1c9   : > { %v5101_v40 = vpop.f32.mrb[14].mxu1 }
 0x1ca   : > { %v5103_v46 = vpop.f32.mrb[15].mxu1 }
 0x1d2   : > { %v5105_v47 = vpop.f32.mrb[16].mxu1 }
 0x1d3   : > { %v5107_v43 = vpop.f32.mrb[17].mxu1 }
 0x1d4   : > { %v5109_v19 = vpop.f32.mrb[18].mxu1 }
 0x1d5   : > { %v5111_v26 = vpop.f32.mrb[19].mxu1 }
 0x1dc   : > { %v5113_v12 = vpop.f32.mrb[20].mxu1 }
 0x1dd   : > { %v5115_v57 = vpop.f32.mrb[21].mxu1 }
 0x1de   : > { %v5117_v55 = vpop.f32.mrb[22].mxu1 }
 0x1df   : > { %v5119_v51 = vpop.f32.mrb[23].mxu1 }
 0x1e5   : > { %v5121_v49 = vpop.f32.mrb[24].mxu1 }
 0x1e6   : > { %v5123_v53 = vpop.f32.mrb[25].mxu1 }
 0x1e7   : > { %v5125_v45 = vpop.f32.mrb[26].mxu1 }
 0x1e8   : > { %v5127_v3 = vpop.f32.mrb[27].mxu1 }
 0x1ed   : > { %v5129_v10 = vpop.f32.mrb[28].mxu1 }
 0x1ee   : > { %v5131_v23 = vpop.f32.mrb[29].mxu1 }
 0x1ef   : > { %v5133_v61 = vpop.f32.mrb[30].mxu1 }
 0x1f0   : > { %v5135_v41 = vpop.f32.mrb[31].mxu1 }
 0x1f5   : > { %v3349_v63 = vpop.f32.mrb[0].mxu0 }
 0x1f6   : > { %v5137_v13 = vadd.f32 %v3349_v63, %v3247_v18  ;;  %v2405_v58 = vpop.f32.mrb[1].mxu0 }
 0x1f7   : > { %v5139_v28 = vadd.f32 %v2405_v58, %v1066_v36  ;;  %v3350_v35 = vpop.f32.mrb[2].mxu0 }
 0x1f8   : > { %v5141_v31 = vadd.f32 %v3350_v35, %v3248_v34  ;;  %v2408_v29 = vpop.f32.mrb[3].mxu0  ;;  %v5147_v2 = vmul.f32 %v5137_v13, %v5137_v13 }
 0x1f9   : > { %v5143_v30 = vadd.f32 %v2408_v29, %v1069_v60  ;;  %v5157_v52 = vmul.f32 %v5139_v28, %v5139_v28 }
 0x1fa   : > { %v3385_v20 = vpack.c.bf16 %v5141_v31, %v5137_v13  ;;  %v5153_v0 = vmul.f32 %v5141_v31, %v5141_v31 }
 0x1fb   : > { %v3381_v9 = vpack.c.bf16 %v5143_v30, %v5139_v28  ;;  %v5163_v48 = vmul.f32 %v5143_v30, %v5143_v30 }
 0x1fd   : > { %v3353_v1 = vpop.f32.mrb[4].mxu0 }
 0x1fe   : > { %v5169_v50 = vadd.f32 %v3353_v1, %v3251_v5  ;;  %v2421_v22 = vpop.f32.mrb[5].mxu0 }
 0x1ff   : > { %v5171_v38 = vadd.f32 %v2421_v22, %v1082_v7  ;;  %v3354_v59 = vpop.f32.mrb[6].mxu0 }
 0x200   : > { %v5173_v11 = vadd.f32 %v3354_v59, %v3252_v54  ;;  %v2424_v8 = vpop.f32.mrb[7].mxu0  ;;  %v5179_v17 = vmul.f32 %v5169_v50, %v5169_v50 }
 0x201   : > { %v5175_v4 = vadd.f32 %v2424_v8, %v1085_v24  ;;  %v5189_v37 = vmul.f32 %v5171_v38, %v5171_v38 }
 0x202   : > { %v5185_v16 = vmul.f32 %v5173_v11, %v5173_v11 }
 0x203   : > { %v5195_v32 = vmul.f32 %v5175_v4, %v5175_v4 }
 0x205   : > { %v3357_v36 = vpop.f32.mrb[8].mxu0 }
 0x206   : > { %v5201_v34 = vadd.f32 %v3357_v36, %v3255_v14  ;;  %v2437_v60 = vpop.f32.mrb[9].mxu0 }
 0x207   : > { %v5203_v5 = vadd.f32 %v2437_v60, %v1098_v27  ;;  %v3358_v7 = vpop.f32.mrb[10].mxu0 }
 0x208   : > { %v5205_v54 = vadd.f32 %v3358_v7, %v3256_v21  ;;  %v2440_v24 = vpop.f32.mrb[11].mxu0  ;;  %v5211_v58 = vmul.f32 %v5201_v34, %v5201_v34 }
 0x209   : > { %v5207_v63 = vadd.f32 %v2440_v24, %v1101_v6  ;;  %v5221_v27 = vmul.f32 %v5203_v5, %v5203_v5 }
 0x20a   : > { %v5217_v14 = vmul.f32 %v5205_v54, %v5205_v54 }
 0x20b   : > { %v5227_v6 = vmul.f32 %v5207_v63, %v5207_v63 }
 0x20d   : > { %v3361_v22 = vpop.f32.mrb[12].mxu0 }
 0x20e   : > { %v5234_v59 = vadd.f32 %v3361_v22, %v5097_v33  ;;  %v2453_v8 = vpop.f32.mrb[13].mxu0 }
 0x20f   : > { %v5237_v36 = vadd.f32 %v2453_v8, %v5099_v15  ;;  %v3362_v60 = vpop.f32.mrb[14].mxu0 }
 0x210   : > { %v5240_v7 = vadd.f32 %v3362_v60, %v5101_v40  ;;  %v2456_v24 = vpop.f32.mrb[15].mxu0  ;;  %v5247_v29 = vmul.f32 %v5234_v59, %v5234_v59 }
 0x211   : > { %v5243_v56 = vadd.f32 %v2456_v24, %v5103_v46  ;;  %v5257_v15 = vmul.f32 %v5237_v36, %v5237_v36 }
 0x212   : > { %v5253_v22 = vmul.f32 %v5240_v7, %v5240_v7 }
 0x213   : > { %v5263_v46 = vmul.f32 %v5243_v56, %v5243_v56 }
 0x215   : > { %v3365_v24 = vpop.f32.mrb[16].mxu0 }
 0x216   : > { %v3459_v1 = vadd.f32 %v3365_v24, %v5105_v47  ;;  %v2469_v18 = vpop.f32.mrb[17].mxu0 }
 0x217   : > { %v3460_v39 = vadd.f32 %v2469_v18, %v5107_v43  ;;  %v3366_v44 = vpop.f32.mrb[18].mxu0 }
 0x218   : > { %v3461_v42 = vadd.f32 %v3366_v44, %v5109_v19  ;;  %v2472_v33 = vpop.f32.mrb[19].mxu0  ;;  %v5273_v35 = vmul.f32 %v3459_v1, %v3459_v1 }
 0x219   : > { %v3462_v40 = vadd.f32 %v2472_v33, %v5111_v26  ;;  %v5277_v8 = vmul.f32 %v3460_v39, %v3460_v39 }
 0x21a   : > { %v3383_v21 = vpack.c.bf16 %v3461_v42, %v3459_v1  ;;  %v5275_v62 = vmul.f32 %v3461_v42, %v3461_v42 }
 0x21b   : > { %v3379_v60 = vpack.c.bf16 %v3462_v40, %v3460_v39  ;;  %v5279_v25 = vmul.f32 %v3462_v40, %v3462_v40 }
 0x21c   : > { %v3415_v47 = vpack.c.bf16 %v5275_v62, %v5273_v35  ;;  %v3865_v62 = vmov 0.0  }
 0x21d   : > { %v3369_v43 = vpop.f32.mrb[20].mxu0  ;;  %3380 = vmatprep.subr.bf16.mxu1 %v3379_v60  ;;  %v3411_v19 = vpack.c.bf16 %v5279_v25, %v5277_v8  ;;  %200 = vst [vmem:[%s192_s19] sm:$0x3] %v3865_v62 }
 0x21e   : > { %v3463_v26 = vadd.f32 %v3369_v43, %v5113_v12  ;;  %v2485_v44 = vpop.f32.mrb[21].mxu0  ;;  %3382 = vmatpush3.bf16.msra.mxu1 %v3381_v9 }
 0x21f   : > { %v3464_v42 = vadd.f32 %v2485_v44, %v5115_v57  ;;  %v3370_v39 = vpop.f32.mrb[22].mxu0  ;;  %3384 = vmatprep.subr.bf16.mxu1 %v3383_v21 }
 0x220   : > { %v3465_v18 = vadd.f32 %v3370_v39, %v5117_v55  ;;  %v2488_v1 = vpop.f32.mrb[23].mxu0  ;;  %v2656_v40 = vmul.f32 %v3463_v26, %v3463_v26 }
 0x221   : > { %v3466_v33 = vadd.f32 %v2488_v1, %v5119_v51  ;;  %v2654_v12 = vmul.f32 %v3464_v42, %v3464_v42  ;;  %v5636_v51 = vpack.c.bf16 %v5175_v4, %v5171_v38 }
 0x222   : > { %v3391_v60 = vpack.c.bf16 %v3465_v18, %v3463_v26  ;;  %v2657_v24 = vmul.f32 %v3465_v18, %v3465_v18  ;;  %3386 = vmatpush3.bf16.msra.mxu1 %v3385_v20 }
 0x223   : > { %v3387_v25 = vpack.c.bf16 %v3466_v33, %v3464_v42  ;;  %v2655_v28 = vmul.f32 %v3466_v33, %v3466_v33 }
 0x224   : > { %v3423_v30 = vpack.c.bf16 %v2657_v24, %v2656_v40 }
 0x225   : > { %v3373_v9 = vpop.f32.mrb[24].mxu0  ;;  %3388 = vmatprep.subr.bf16.mxu1 %v3387_v25  ;;  %v3419_v57 = vpack.c.bf16 %v2655_v28, %v2654_v12 }
 0x226   : > { %v3467_v21 = vadd.f32 %v3373_v9, %v5121_v49  ;;  %v2501_v55 = vpop.f32.mrb[25].mxu0  ;;  %3390 = vmatpush3.bf16.msra.mxu1 %v5636_v51  ;;  %v5637_v49 = vpack.c.bf16 %v5173_v11, %v5169_v50 }
 0x227   : > { %v3468_v8 = vadd.f32 %v2501_v55, %v5123_v53  ;;  %v3374_v43 = vpop.f32.mrb[26].mxu0  ;;  %3392 = vmatprep.subr.bf16.mxu1 %v3391_v60  ;;  %v5640_v55 = vpack.c.bf16 %v5243_v56, %v5237_v36  ;;  %v5644_v56 = vpack.c.bf16 %v5153_v0, %v5147_v2  ;;  %v5648_v2 = vpack.c.bf16 %v5217_v14, %v5211_v58 }
 0x228   : > { %v3469_v13 = vadd.f32 %v3374_v43, %v5125_v45  ;;  %v2504_v31 = vpop.f32.mrb[27].mxu0  ;;  %v2660_v26 = vmul.f32 %v3467_v21, %v3467_v21  ;;  %v5649_v0 = vpack.c.bf16 %v5263_v46, %v5257_v15 }
 0x229   : > { %v3470_v20 = vadd.f32 %v2504_v31, %v5127_v3  ;;  %v2658_v39 = vmul.f32 %v3468_v8, %v3468_v8  ;;  %v5638_v3 = vpack.c.bf16 %v5207_v63, %v5203_v5 }
 0x22a   : > { %v3399_v44 = vpack.c.bf16 %v3469_v13, %v3467_v21  ;;  %v2661_v42 = vmul.f32 %v3469_v13, %v3469_v13  ;;  %3394 = vmatpush3.bf16.msra.mxu1 %v5637_v49 }
 0x22b   : > { %v3395_v18 = vpack.c.bf16 %v3470_v20, %v3468_v8  ;;  %v2659_v38 = vmul.f32 %v3470_v20, %v3470_v20 }
 0x22c   : > { %v3431_v4 = vpack.c.bf16 %v2661_v42, %v2660_v26 }
 0x22d   : > { %v3377_v1 = vpop.f32.mrb[28].mxu0  ;;  %3396 = vmatprep.subr.bf16.mxu1 %v3395_v18  ;;  %v3427_v53 = vpack.c.bf16 %v2659_v38, %v2658_v39 }
 0x22e   : > { %v3471_v33 = vadd.f32 %v3377_v1, %v5129_v10  ;;  %v2517_v45 = vpop.f32.mrb[29].mxu0  ;;  %3398 = vmatpush3.bf16.msra.mxu1 %v5638_v3  ;;  %v5639_v10 = vpack.c.bf16 %v5205_v54, %v5201_v34  ;;  %v5643_v34 = vpack.c.bf16 %v5163_v48, %v5157_v52  ;;  %v5645_v54 = vpack.c.bf16 %v5195_v32, %v5189_v37 }
 0x22f   : > { %v3472_v40 = vadd.f32 %v2517_v45, %v5131_v23  ;;  %v3378_v60 = vpop.f32.mrb[30].mxu0  ;;  %3400 = vmatprep.subr.bf16.mxu1 %v3399_v44  ;;  %v5646_v52 = vpack.c.bf16 %v5185_v16, %v5179_v17  ;;  %v5647_v48 = vpack.c.bf16 %v5227_v6, %v5221_v27  ;;  %v5650_v17 = vpack.c.bf16 %v5253_v22, %v5247_v29  ;;  %v2736_v27 = vld [vmem:[%s192_s19] sm:$0x3] }
 0x230   : > { %v3473_v50 = vadd.f32 %v3378_v60, %v5133_v61  ;;  %v2520_v11 = vpop.f32.mrb[31].mxu0  ;;  %v2664_v12 = vmul.f32 %v3471_v33, %v3471_v33  ;;  %v5641_v61 = vpack.c.bf16 %v5240_v7, %v5234_v59 }
 0x231   : > { %v3474_v24 = vadd.f32 %v2520_v11, %v5135_v41  ;;  %v2662_v9 = vmul.f32 %v3472_v40, %v3472_v40  ;;  %v5642_v41 = vmov 1.0  }
 0x232   : > { %v3407_v25 = vpack.c.bf16 %v3473_v50, %v3471_v33  ;;  %v2665_v28 = vmul.f32 %v3473_v50, %v3473_v50  ;;  %3402 = vmatpush3.bf16.msra.mxu1 %v5639_v10 }
 0x233   : > { %v3403_v21 = vpack.c.bf16 %v3474_v24, %v3472_v40  ;;  %v2663_v5 = vmul.f32 %v3474_v24, %v3474_v24 }
 0x234   : > { %v3439_v63 = vpack.c.bf16 %v2665_v28, %v2664_v12 }
 0x235   : > { %3404 = vmatprep.subr.bf16.mxu1 %v3403_v21  ;;  %v3435_v23 = vpack.c.bf16 %v2663_v5, %v2662_v9 }
 0x236   : > { %3406 = vmatpush3.bf16.msra.mxu1 %v5640_v55 }
 0x237   : > { %3408 = vmatprep.subr.bf16.mxu1 %v3407_v25 }
 0x23a   : > { %3410 = vmatpush3.bf16.msra.mxu1 %v5641_v61 }
 0x23b   : > { %3412 = vmatprep.subr.bf16.mxu1 %v3411_v19 }
 0x23d   : > { %2629 = vmatmul.mubr.f32.vlgmr.msra.gmra.mrb[32].mxu1 %v5642_v41 }
 0x23e   : > { %3414 = vmatpush3.bf16.msra.mxu1 %v5643_v34  ;;  %2730 = vmatprep.mubr.f32.mxu1 %v5642_v41 }
 0x23f   : > { %3416 = vmatprep.subr.bf16.mxu1 %v3415_v47 }
 0x242   : > { %3418 = vmatpush3.bf16.msra.mxu1 %v5644_v56 }
 0x243   : > { %3420 = vmatprep.subr.bf16.mxu1 %v3419_v57 }
 0x246   : > { %3422 = vmatpush3.bf16.msra.mxu1 %v5645_v54 }
 0x247   : > { %3424 = vmatprep.subr.bf16.mxu1 %v3423_v30 }
 0x24a   : > { %3426 = vmatpush3.bf16.msra.mxu1 %v5646_v52 }
 0x24b   : > { %3428 = vmatprep.subr.bf16.mxu1 %v3427_v53 }
 0x24e   : > { %3430 = vmatpush3.bf16.msra.mxu1 %v5647_v48 }
 0x24f   : > { %3432 = vmatprep.subr.bf16.mxu1 %v3431_v4 }
 0x252   : > { %3434 = vmatpush3.bf16.msra.mxu1 %v5648_v2 }
 0x253   : > { %3436 = vmatprep.subr.bf16.mxu1 %v3435_v23 }
 0x256   : > { %3438 = vmatpush3.bf16.msra.mxu1 %v5649_v0 }
 0x257   : > { %3440 = vmatprep.subr.bf16.mxu1 %v3439_v63 }
 0x25a   : > { %3442 = vmatpush3.bf16.msra.mxu1 %v5650_v17 }
 0x25d   : > { %2731 = vmatmul.mubr.f32.vlgmr.msra.gmra.mrb[34].mxu1 %v5642_v41 }
 0x310   : > { %v3171_v16 = vpop.f32.mrb[32].mxu1 }
 0x311   : > { %v3172_v37 = vpop.f32.mrb[33].mxu1 }
 0x312   : > { %v3173_v32 = vadd.f32 %v3172_v37, %v3171_v16 }
 0x330   : > { %v3206_v58 = vpop.f32.mrb[34].mxu1 }
 0x331   : > { %v3207_v35 = vpop.f32.mrb[35].mxu1 }
 0x332   : > { %v3208_v14 = vadd.f32 %v3207_v35, %v3206_v58 }
 0x334   : > { %v2738_v6 = vrot.slane %v3208_v14, 7 }
 0x336   : > { %v2741_v29 = vsel %vm2740_vm13, %v3173_v32, %v2738_v6 }
 0x337   : > { %v2742_v59 = vadd.f32 %v2741_v29, %v2736_v27 }
 0x339   : > { %2743 = vst [vmem:[%s192_s19] sm:$0x3] %v2742_v59 }
 0x33a   : > { %3783 = shalt.err (!%p3780_p5)
}
 0x33b   : > { %s3784_s4 = scalar_lea.hbm %s5356_s6, 32  ;;  %s3788_s8 = scalar_lea.hbm %s5407_s2, 64 }
 0x33c   : > { %p3785_p9 = scmp.ne.s32.totalorder %s5356_s6, %s3784_s4  ;;  %p3789_p3 = scmp.lt.u32.totalorder %s5356_s6, %s5407_s2 }
 0x33d   : > { %p3790_p7 = scmp.lt.u32.totalorder %s3788_s8, %s3784_s4  ;;  %p3792_p4 = scmp.lt.u32.totalorder %s3784_s4, %s5356_s6 }
 0x33e   : > { %p3786_p1 = pnand %p3785_p9, %p3974_p10 }
 0x33f   : > { %p3791_p11 = por %p3790_p7, %p3789_p3 }
 0x340   : > { %p3787_p2 = pneg %p3786_p1 }
 0x341   : > { %p3793_p6 = por %p3792_p4, %p3791_p11 }
 0x343   : > { %p3794_p8 = pnand %p3793_p6, %p3787_p2 }
 0x345   : > { %3797 = shalt.err (!%p3794_p8)
}
 0x346   : > { %3585 = dma.vmem_to_hbm [thread:$0]  (%p3974_p10), %s5358_s30, 32, %s5356_s6, %s2745_s27  }
 0x347 PF: > { %s2770_s26 = sand.u32 1, %s3836_s9   ;;  %p5651_p12 = scmp.ne.s32.totalorder %s5516_s20, 0 }
 0x348   : > { %p5652_p13 = scmp.ge.s32.totalorder %s3856_s14, 2  ;;  %s2771_s17 = scalar_lea.sflag [#allocation4], %s2770_s26 }
 0x34a   : > { %p3596_p0 = pnand %p5652_p13, %p5651_p12 }
 0x34c   : > { %3831 = dma.done.wait (!%p3596_p0), %s2771_s17, 32  }
 0x34d   : > { %3833 = vsyncadd (!%p3596_p0), %s2771_s17, 4294967264  ;;  %s19_s14 = sadd.s32 1, %s3856_s14   ;;  %s5653_s9 = smov %s3840_s10 }
 0x34e   : > { %p16_p5 = scmp.ge.s32.totalorder %s19_s14, 4   ;;  %s5654_s10 = smov %s3844_s11 }
 0x34f   : > { %s5655_s11 = smov %s3983_s28  ;;  %s5656_s12 = smov %s3852_s13 }
 0x350   : > { %s5657_s13 = smov %s5659_s25  ;;  %18 = sbr.rel (!%p16_p5) target bundleno = 7 (0x7), region = 85 }
 0x357   :  { %2776 = vsyncpa [#allocation3], 1 }
 0x358   :  { %2778 = vsyncpa [#allocation3 + $0x1], 1 }
 0x359   :  { %2779 = vsyncpa [#allocation6], 1 }
 0x35a   :  { %2780 = vsyncpa [#allocation4], 1 }
 0x35b   :  { %2782 = vsyncpa [#allocation4 + $0x1], 1 }

</bundles_post_ra>
